<compile_context>
chip_gen: v6e
topology: v6e:2x2x1
jax: 0.10.0
libtpu: 0.0.40
codegen_flags: <defaults>
</compile_context>

<pallas_src>
import functools
import math

import numpy as np
import jax
import jax.numpy as jnp
from jax.experimental import pallas as pl
from jax.experimental.pallas import tpu as pltpu


# ----------------------------------------------------------------------------
# Pallas kernels
# ----------------------------------------------------------------------------
def _fused_affine_conv_stats_kernel(x_ref, scale_ref, bias_ref, w_ref,
                                    y_ref, psum_ref, pssq_ref, zpad_ref,
                                    *, bn, h, w, cin, cout, apply_relu):
    """[prev-block BN affine (+ReLU)] -> 3x3 'same' conv -> partial BN stats.

    x_ref     : (bn, H, W*Cin)      f32  previous raw conv output / block-1 input
    scale_ref : (1, W*Cin)          f32  per-channel BN scale tiled across W
    bias_ref  : (1, W*Cin)          f32  per-channel BN bias  tiled across W
    w_ref     : (3, W*Cin, W*Cout)  bf16 row-Toeplitz conv weights (one slab/dy)
    y_ref     : (bn, H, W*Cout)     f32  raw conv output (pre-BN), lane-dense
    psum_ref  : (1, 1, W*Cout)      f32  partial sum   over bn*H rows
    pssq_ref  : (1, 1, W*Cout)      f32  partial sumsq over bn*H rows
    zpad_ref  : (bn*(H+2), W*Cin)   bf16 scratch: per-image vertically padded,
                                    affined input (cast to bf16 exactly once)
    """
    hp = h + 2
    k = w * cin

    # Fused folded-BN(+ReLU) of the previous block, applied on load (f32 VPU).
    x = x_ref[...]                                            # (bn, H, W*Cin)
    z = x * scale_ref[...] + bias_ref[...]
    if apply_relu:
        z = jnp.maximum(z, 0.0)
    zb = z.astype(jnp.bfloat16)                               # single f32->bf16 cast

    # Write the padded slab: only the 1-row halos above/below each image are
    # zero; interiors are fully overwritten every step.
    zero_row = jnp.zeros((1, k), jnp.bfloat16)
    for i in range(bn):                                       # statically unrolled
        base = i * hp
        zpad_ref[base:base + 1, :] = zero_row                 # top halo
        zpad_ref[base + 1:base + 1 + h, :] = zb[i]            # interior
        zpad_ref[base + 1 + h:base + 2 + h, :] = zero_row     # bottom halo

    # 3 lane-dense MXU matmuls, K = W*Cin (exact 128 multiple at test shape),
    # M = bn*(H+2)-2 rows.  bf16 operands, f32 accumulate.  The 2 rows per
    # image boundary are garbage (mix zero halos) and are dropped below.
    m_rows = bn * hp - 2
    acc = jnp.zeros((m_rows, w * cout), jnp.float32)
    for dy in range(3):                                       # statically unrolled
        # TODO(synk): if the dy=1,2 sublane-offset reads materialize relayout
        # copies at large H, pre-shift with pltpu.roll (XLU slot) instead.
        acc = acc + jnp.dot(zpad_ref[dy:dy + m_rows, :], w_ref[dy],
                            preferred_element_type=jnp.float32)

    # Store valid rows + per-step partial BN statistics (f32).
    ps = jnp.zeros((1, w * cout), jnp.float32)
    pq = jnp.zeros((1, w * cout), jnp.float32)
    for i in range(bn):
        v = acc[i * hp:i * hp + h]                            # (H, W*Cout) valid rows
        y_ref[i] = v
        ps = ps + jnp.sum(v, axis=0, keepdims=True)
        pq = pq + jnp.sum(v * v, axis=0, keepdims=True)
    psum_ref[...] = ps[None]
    pssq_ref[...] = pq[None]


def _bn_relu_kernel(y_ref, scale_ref, bias_ref, o_ref):
    """Folded BatchNorm affine + ReLU for the final block (lane-dense layout)."""
    o_ref[...] = jnp.maximum(y_ref[...] * scale_ref[...] + bias_ref[...], 0.0)


# ----------------------------------------------------------------------------
# pallas_call wrappers
# ----------------------------------------------------------------------------
def conv_block(x, scale_t, bias_t, wt, *, h, w, cin, cout, apply_relu,
               block_n=None):
    """x: (N, H, W*Cin) f32, scale_t/bias_t: (1, W*Cin) f32,
    wt: (3, W*Cin, W*Cout) bf16.  `block_n` images per grid step
    (default: whole batch -> grid=(1,) at small shapes)."""
    n = x.shape[0]
    if block_n is None:
        block_n = n
    assert n % block_n == 0
    steps = n // block_n

    kernel = functools.partial(_fused_affine_conv_stats_kernel,
                               bn=block_n, h=h, w=w, cin=cin, cout=cout,
                               apply_relu=apply_relu)
    out_shape = (
        jax.ShapeDtypeStruct((n, h, w * cout), jnp.float32),       # raw conv out
        jax.ShapeDtypeStruct((steps, 1, w * cout), jnp.float32),   # partial sum
        jax.ShapeDtypeStruct((steps, 1, w * cout), jnp.float32),   # partial sumsq
    )
    return pl.pallas_call(
        kernel,
        out_shape=out_shape,
        grid=(steps,),
        in_specs=[
            pl.BlockSpec((block_n, h, w * cin), lambda i: (i, 0, 0)),
            pl.BlockSpec((1, w * cin), lambda i: (0, 0)),
            pl.BlockSpec((1, w * cin), lambda i: (0, 0)),
            pl.BlockSpec((3, w * cin, w * cout), lambda i: (0, 0, 0)),
        ],
        out_specs=(
            pl.BlockSpec((block_n, h, w * cout), lambda i: (i, 0, 0)),
            pl.BlockSpec((1, 1, w * cout), lambda i: (i, 0, 0)),
            pl.BlockSpec((1, 1, w * cout), lambda i: (i, 0, 0)),
        ),
        scratch_shapes=[pltpu.VMEM((block_n * (h + 2), w * cin), jnp.bfloat16)],
        compiler_params=pltpu.CompilerParams(
            dimension_semantics=("parallel",)),
    )(x, scale_t, bias_t, wt)


def bn_relu(y, scale_t, bias_t):
    """y: (N, H, W*C) f32, scale_t/bias_t: (1, W*C) f32.  Output aliases y
    (u3 is dead afterwards), avoiding a second HBM buffer."""
    n, h, wc = y.shape
    return pl.pallas_call(
        _bn_relu_kernel,
        out_shape=jax.ShapeDtypeStruct((n, h, wc), jnp.float32),
        grid=(1,),
        in_specs=[
            pl.BlockSpec((n, h, wc), lambda i: (0, 0, 0)),
            pl.BlockSpec((1, wc), lambda i: (0, 0)),
            pl.BlockSpec((1, wc), lambda i: (0, 0)),
        ],
        out_specs=pl.BlockSpec((n, h, wc), lambda i: (0, 0, 0)),
        input_output_aliases={0: 0},
        compiler_params=pltpu.CompilerParams(
            dimension_semantics=("arbitrary",)),
    )(y, scale_t, bias_t)


# ----------------------------------------------------------------------------
# Plain-JAX glue (upsample, weight restructuring, BN folding)
# ----------------------------------------------------------------------------
def upsample_bilinear_align_corners(x, out_h, out_w):
    """x: (N, h, w, C) NHWC -> (N, out_h, out_w, C).
    Matches F.upsample(mode='bilinear', align_corners=True)."""
    n, h, w, c = x.shape
    ys = (jnp.arange(out_h, dtype=jnp.float32) * ((h - 1) / (out_h - 1))
          if out_h > 1 else jnp.zeros((out_h,), jnp.float32))
    xs = (jnp.arange(out_w, dtype=jnp.float32) * ((w - 1) / (out_w - 1))
          if out_w > 1 else jnp.zeros((out_w,), jnp.float32))

    y0 = jnp.clip(jnp.floor(ys).astype(jnp.int32), 0, h - 1)
    y1 = jnp.minimum(y0 + 1, h - 1)
    x0 = jnp.clip(jnp.floor(xs).astype(jnp.int32), 0, w - 1)
    x1 = jnp.minimum(x0 + 1, w - 1)
    wy = (ys - y0.astype(jnp.float32))[None, :, None, None]
    wx = (xs - x0.astype(jnp.float32))[None, None, :, None]

    xy0 = x[:, y0]
    xy1 = x[:, y1]
    top = xy0[:, :, x0] * (1.0 - wx) + xy0[:, :, x1] * wx
    bot = xy1[:, :, x0] * (1.0 - wx) + xy1[:, :, x1] * wx
    return top * (1.0 - wy) + bot * wy


def toeplitz_conv_weights(k, w):
    """k: (3, 3, Cin, Cout) f32 taps -> (3, W*Cin, W*Cout) bf16 row-Toeplitz
    slabs (horizontal zero-pad columns clipped away so K = W*Cin exactly)."""
    cin, cout = k.shape[2], k.shape[3]
    band = np.zeros((3, w, w), np.float32)
    for dx in range(3):
        for q in range(w):
            p = q + dx - 1
            if 0 <= p < w:
                band[dx, p, q] = 1.0
    # wt[dy, p, i, q, o] = K[dy, p-q+1, i, o] if |p-q| <= 1 else 0
    wt = jnp.einsum('xpq,yxio->ypiqo', jnp.asarray(band), k)
    return wt.reshape(3, w * cin, w * cout).astype(jnp.bfloat16)


def bn_fold(psum, pssq, count, w, cout, gamma, beta, eps=1e-4):
    """Reduce per-step partial stats -> folded BN scale/bias (per channel)."""
    s = psum.reshape(-1, w, cout).sum(axis=(0, 1))
    ss = pssq.reshape(-1, w, cout).sum(axis=(0, 1))
    mean = s / count
    var = jnp.maximum(ss / count - mean * mean, 0.0)   # guard one-pass cancellation
    scale = gamma / jnp.sqrt(var + eps)
    bias = beta - mean * scale
    return scale, bias


def _tile_wc(v, w):
    """Per-channel vector (C,) -> (1, W*C) tiled across width (lane-dense)."""
    return jnp.tile(v, w)[None, :]


def init_params(key, x_channels, y_channels):
    def conv_k(k, cin, cout):
        return (jax.random.normal(k, (3, 3, cin, cout), jnp.float32)
                * (1.0 / math.sqrt(9.0 * cin)))

    k1, k2, k3 = jax.random.split(key, 3)
    return {
        "k1": conv_k(k1, 2 * x_channels, y_channels),
        "k2": conv_k(k2, y_channels, y_channels),
        "k3": conv_k(k3, y_channels, y_channels),
        # BatchNorm2d default init: gamma=1, beta=0
        "g1": jnp.ones((y_channels,), jnp.float32),
        "b1": jnp.zeros((y_channels,), jnp.float32),
        "g2": jnp.ones((y_channels,), jnp.float32),
        "b2": jnp.zeros((y_channels,), jnp.float32),
        "g3": jnp.ones((y_channels,), jnp.float32),
        "b3": jnp.zeros((y_channels,), jnp.float32),
    }


def sphere_decoder(down_nchw, x_nchw, params, eps=1e-4):
    """PyTorch-facing entry point: NCHW in, NCHW out."""
    n, _, h, w = down_nchw.shape
    down = jnp.transpose(down_nchw, (0, 2, 3, 1))   # -> NHWC
    x = jnp.transpose(x_nchw, (0, 2, 3, 1))         # -> NHWC

    y = upsample_bilinear_align_corners(x, h, w)
    y = jnp.concatenate([y, down], axis=-1)         # (N, H, W, 2*Cx)
    cin0 = y.shape[-1]
    cout = params["g1"].shape[0]
    y = y.reshape(n, h, w * cin0)                   # lane-dense activation layout

    wt1 = toeplitz_conv_weights(params["k1"], w)
    wt2 = toeplitz_conv_weights(params["k2"], w)
    wt3 = toeplitz_conv_weights(params["k3"], w)

    ones0 = jnp.ones((1, w * cin0), jnp.float32)
    zeros0 = jnp.zeros((1, w * cin0), jnp.float32)
    cnt = float(n * h * w)

    # Block 1: identity input affine (raw concat input), conv1 + stats.
    u1, s1, q1 = conv_block(y, ones0, zeros0, wt1,
                            h=h, w=w, cin=cin0, cout=cout, apply_relu=False)
    sc1, bi1 = bn_fold(s1, q1, cnt, w, cout, params["g1"], params["b1"], eps)

    # Block 2: BN1+ReLU fused into conv2's input path.
    u2, s2, q2 = conv_block(u1, _tile_wc(sc1, w), _tile_wc(bi1, w), wt2,
                            h=h, w=w, cin=cout, cout=cout, apply_relu=True)
    sc2, bi2 = bn_fold(s2, q2, cnt, w, cout, params["g2"], params["b2"], eps)

    # Block 3: BN2+ReLU fused into conv3's input path.
    u3, s3, q3 = conv_block(u2, _tile_wc(sc2, w), _tile_wc(bi2, w), wt3,
                            h=h, w=w, cin=cout, cout=cout, apply_relu=True)
    sc3, bi3 = bn_fold(s3, q3, cnt, w, cout, params["g3"], params["b3"], eps)

    # Final BN3+ReLU: training-mode BN needs full-batch stats, so it cannot be
    # applied inside the pass that produced u3 -> one small lane-dense kernel.
    out = bn_relu(u3, _tile_wc(sc3, w), _tile_wc(bi3, w))    # (N, H, W*Cout)

    out = out.reshape(n, h, w, cout)
    return jnp.transpose(out, (0, 3, 1, 2))         # back to NCHW


# ----------------------------------------------------------------------------
# Pure-JAX reference (f32) for correctness checking
# ----------------------------------------------------------------------------
def _reference_decoder(down_nchw, x_nchw, params, eps=1e-4):
    n, _, h, w = down_nchw.shape
    down = jnp.transpose(down_nchw, (0, 2, 3, 1))
    x = jnp.transpose(x_nchw, (0, 2, 3, 1))
    y = upsample_bilinear_align_corners(x, h, w)
    y = jnp.concatenate([y, down], axis=-1)

    def block(z, k, g, b):
        u = jax.lax.conv_general_dilated(
            z, k, (1, 1), 'SAME', dimension_numbers=('NHWC', 'HWIO', 'NHWC'))
        mean = u.mean(axis=(0, 1, 2))
        var = ((u - mean) ** 2).mean(axis=(0, 1, 2))
        return jnp.maximum((u - mean) / jnp.sqrt(var + eps) * g + b, 0.0)

    y = block(y, params["k1"], params["g1"], params["b1"])
    y = block(y, params["k2"], params["g2"], params["b2"])
    y = block(y, params["k3"], params["g3"], params["b3"])
    return jnp.transpose(y, (0, 3, 1, 2))


if __name__ == "__main__":
    x_channels, y_channels = 4, 8
    N, H, W = 2, 16, 16

    key = jax.random.PRNGKey(0)
    kd, kx, kp = jax.random.split(key, 3)
    down = jax.random.normal(kd, (N, x_channels, H, W), jnp.float32)
    x = jax.random.normal(kx, (N, x_channels, H // 2, W // 2), jnp.float32)
    params = init_params(kp, x_channels, y_channels)

    out = jax.jit(sphere_decoder)(down, x, params)
    out = jax.block_until_ready(out)

    assert out.shape == (N, y_channels, H, W), out.shape
    assert bool(jnp.all(jnp.isfinite(out)))
    assert bool(jnp.all(out >= 0.0))  # final ReLU

    ref = _reference_decoder(down, x, params)
    max_err = float(jnp.max(jnp.abs(out - ref)))
    assert max_err < 5e-2, f"max abs err vs f32 reference: {max_err}"

    print("KERNEL_OK")
</pallas_src>

<mosaic_0001>
module attributes {stable_mosaic.version = 11 : i64} {
  func.func @_fused_affine_conv_stats_kernel(%arg0: i32, %arg1: memref<2x16x128xf32, #tpu.memory_space<vmem>>, %arg2: memref<1x128xf32, #tpu.memory_space<vmem>>, %arg3: memref<1x128xf32, #tpu.memory_space<vmem>>, %arg4: memref<3x128x128xbf16, #tpu.memory_space<vmem>>, %arg5: memref<2x16x128xf32, #tpu.memory_space<vmem>>, %arg6: memref<1x1x128xf32, #tpu.memory_space<vmem>>, %arg7: memref<1x1x128xf32, #tpu.memory_space<vmem>>, %arg8: memref<36x128xbf16, #tpu.memory_space<vmem>>) attributes {dimension_semantics = [#tpu.dimension_semantics<parallel>], iteration_bounds = array<i64: 1>, scalar_prefetch = 0 : i64, scratch_operands = 1 : i64, tpu.core_type = #tpu.core_type<tc>, window_params = [{transform_indices = @transform_0, window_bounds = array<i64: 2, 16, 128>}, {pipeline_mode = #tpu.pipeline_mode<synchronous>, transform_indices = @transform_1, window_bounds = array<i64: 1, 128>}, {pipeline_mode = #tpu.pipeline_mode<synchronous>, transform_indices = @transform_2, window_bounds = array<i64: 1, 128>}, {pipeline_mode = #tpu.pipeline_mode<synchronous>, transform_indices = @transform_3, window_bounds = array<i64: 3, 128, 128>}, {transform_indices = @transform_4, window_bounds = array<i64: 2, 16, 128>}, {transform_indices = @transform_5, window_bounds = array<i64: 1, 1, 128>}, {transform_indices = @transform_6, window_bounds = array<i64: 1, 1, 128>}]} {
    %c0 = arith.constant 0 : index
    %c0_0 = arith.constant 0 : index
    %c0_1 = arith.constant 0 : index
    %0 = vector.load %arg1[%c0, %c0_0, %c0_1] : memref<2x16x128xf32, #tpu.memory_space<vmem>>, vector<2x16x128xf32>
    %c0_2 = arith.constant 0 : index
    %c0_3 = arith.constant 0 : index
    %1 = vector.load %arg2[%c0_2, %c0_3] : memref<1x128xf32, #tpu.memory_space<vmem>>, vector<1x128xf32>
    %2 = vector.shape_cast %1 : vector<1x128xf32> to vector<1x1x128xf32>
    %3 = vector.broadcast %2 : vector<1x1x128xf32> to vector<2x16x128xf32>
    %4 = arith.mulf %0, %3 : vector<2x16x128xf32>
    %c0_4 = arith.constant 0 : index
    %c0_5 = arith.constant 0 : index
    %5 = vector.load %arg3[%c0_4, %c0_5] : memref<1x128xf32, #tpu.memory_space<vmem>>, vector<1x128xf32>
    %6 = vector.shape_cast %5 : vector<1x128xf32> to vector<1x1x128xf32>
    %7 = vector.broadcast %6 : vector<1x1x128xf32> to vector<2x16x128xf32>
    %8 = arith.addf %4, %7 : vector<2x16x128xf32>
    %9 = arith.truncf %8 : vector<2x16x128xf32> to vector<2x16x128xbf16>
    %cst = arith.constant 0.000000e+00 : bf16
    %10 = vector.broadcast %cst : bf16 to vector<1x128xbf16>
    %c0_6 = arith.constant 0 : index
    %c0_7 = arith.constant 0 : index
    %11 = vector.load %arg8[%c0_6, %c0_7] : memref<36x128xbf16, #tpu.memory_space<vmem>>, vector<1x128xbf16>
    tpu.vector_store %arg8[%c0_6, %c0_7], %10 {strides = array<i32>} : memref<36x128xbf16, #tpu.memory_space<vmem>>, vector<1x128xbf16>,
    %12 = vector.extract_strided_slice %9 {offsets = [0, 0, 0], sizes = [1, 16, 128], strides = [1, 1, 1]} : vector<2x16x128xbf16> to vector<1x16x128xbf16>
    %13 = vector.shape_cast %12 : vector<1x16x128xbf16> to vector<16x128xbf16>
    %c1 = arith.constant 1 : index
    %c0_8 = arith.constant 0 : index
    %14 = vector.load %arg8[%c1, %c0_8] : memref<36x128xbf16, #tpu.memory_space<vmem>>, vector<16x128xbf16>
    tpu.vector_store %arg8[%c1, %c0_8], %13 {strides = array<i32>} : memref<36x128xbf16, #tpu.memory_space<vmem>>, vector<16x128xbf16>,
    %c17 = arith.constant 17 : index
    %c0_9 = arith.constant 0 : index
    %15 = vector.load %arg8[%c17, %c0_9] : memref<36x128xbf16, #tpu.memory_space<vmem>>, vector<1x128xbf16>
    tpu.vector_store %arg8[%c17, %c0_9], %10 {strides = array<i32>} : memref<36x128xbf16, #tpu.memory_space<vmem>>, vector<1x128xbf16>,
    %c18 = arith.constant 18 : index
    %c0_10 = arith.constant 0 : index
    %16 = vector.load %arg8[%c18, %c0_10] : memref<36x128xbf16, #tpu.memory_space<vmem>>, vector<1x128xbf16>
    tpu.vector_store %arg8[%c18, %c0_10], %10 {strides = array<i32>} : memref<36x128xbf16, #tpu.memory_space<vmem>>, vector<1x128xbf16>,
    %17 = vector.extract_strided_slice %9 {offsets = [1, 0, 0], sizes = [1, 16, 128], strides = [1, 1, 1]} : vector<2x16x128xbf16> to vector<1x16x128xbf16>
    %18 = vector.shape_cast %17 : vector<1x16x128xbf16> to vector<16x128xbf16>
    %c19 = arith.constant 19 : index
    %c0_11 = arith.constant 0 : index
    %19 = vector.load %arg8[%c19, %c0_11] : memref<36x128xbf16, #tpu.memory_space<vmem>>, vector<16x128xbf16>
    tpu.vector_store %arg8[%c19, %c0_11], %18 {strides = array<i32>} : memref<36x128xbf16, #tpu.memory_space<vmem>>, vector<16x128xbf16>,
    %c35 = arith.constant 35 : index
    %c0_12 = arith.constant 0 : index
    %20 = vector.load %arg8[%c35, %c0_12] : memref<36x128xbf16, #tpu.memory_space<vmem>>, vector<1x128xbf16>
    tpu.vector_store %arg8[%c35, %c0_12], %10 {strides = array<i32>} : memref<36x128xbf16, #tpu.memory_space<vmem>>, vector<1x128xbf16>,
    %cst_13 = arith.constant 0.000000e+00 : f32
    %21 = vector.broadcast %cst_13 : f32 to vector<34x128xf32>
    %c0_14 = arith.constant 0 : index
    %c0_15 = arith.constant 0 : index
    %22 = vector.load %arg8[%c0_14, %c0_15] : memref<36x128xbf16, #tpu.memory_space<vmem>>, vector<34x128xbf16>
    %c0_16 = arith.constant 0 : index
    %c0_17 = arith.constant 0 : index
    %c0_18 = arith.constant 0 : index
    %23 = vector.load %arg4[%c0_16, %c0_17, %c0_18] : memref<3x128x128xbf16, #tpu.memory_space<vmem>>, vector<1x128x128xbf16>
    %24 = vector.shape_cast %23 : vector<1x128x128xbf16> to vector<128x128xbf16>
    %cst_19 = arith.constant dense<0.000000e+00> : vector<34x128xf32>
    %25 = tpu.matmul %22, %24, %cst_19 {dimension_numbers = #tpu.dot_dimension_numbers<[1], [0], [0], [1], [0, 0, 1, 1], [], []>} : vector<34x128xbf16>, vector<128x128xbf16>, vector<34x128xf32> -> vector<34x128xf32>
    %26 = arith.addf %21, %25 : vector<34x128xf32>
    %c1_20 = arith.constant 1 : index
    %c0_21 = arith.constant 0 : index
    %27 = vector.load %arg8[%c1_20, %c0_21] : memref<36x128xbf16, #tpu.memory_space<vmem>>, vector<34x128xbf16>
    %c1_22 = arith.constant 1 : index
    %c0_23 = arith.constant 0 : index
    %c0_24 = arith.constant 0 : index
    %28 = vector.load %arg4[%c1_22, %c0_23, %c0_24] : memref<3x128x128xbf16, #tpu.memory_space<vmem>>, vector<1x128x128xbf16>
    %29 = vector.shape_cast %28 : vector<1x128x128xbf16> to vector<128x128xbf16>
    %cst_25 = arith.constant dense<0.000000e+00> : vector<34x128xf32>
    %30 = tpu.matmul %27, %29, %cst_25 {dimension_numbers = #tpu.dot_dimension_numbers<[1], [0], [0], [1], [0, 0, 1, 1], [], []>} : vector<34x128xbf16>, vector<128x128xbf16>, vector<34x128xf32> -> vector<34x128xf32>
    %31 = arith.addf %26, %30 : vector<34x128xf32>
    %c2 = arith.constant 2 : index
    %c0_26 = arith.constant 0 : index
    %32 = vector.load %arg8[%c2, %c0_26] : memref<36x128xbf16, #tpu.memory_space<vmem>>, vector<34x128xbf16>
    %c2_27 = arith.constant 2 : index
    %c0_28 = arith.constant 0 : index
    %c0_29 = arith.constant 0 : index
    %33 = vector.load %arg4[%c2_27, %c0_28, %c0_29] : memref<3x128x128xbf16, #tpu.memory_space<vmem>>, vector<1x128x128xbf16>
    %34 = vector.shape_cast %33 : vector<1x128x128xbf16> to vector<128x128xbf16>
    %cst_30 = arith.constant dense<0.000000e+00> : vector<34x128xf32>
    %35 = tpu.matmul %32, %34, %cst_30 {dimension_numbers = #tpu.dot_dimension_numbers<[1], [0], [0], [1], [0, 0, 1, 1], [], []>} : vector<34x128xbf16>, vector<128x128xbf16>, vector<34x128xf32> -> vector<34x128xf32>
    %36 = arith.addf %31, %35 : vector<34x128xf32>
    %cst_31 = arith.constant 0.000000e+00 : f32
    %37 = vector.broadcast %cst_31 : f32 to vector<1x128xf32>
    %cst_32 = arith.constant 0.000000e+00 : f32
    %38 = vector.broadcast %cst_32 : f32 to vector<1x128xf32>
    %39 = vector.extract_strided_slice %36 {offsets = [0, 0], sizes = [16, 128], strides = [1, 1]} : vector<34x128xf32> to vector<16x128xf32>
    %c0_33 = arith.constant 0 : index
    %c0_34 = arith.constant 0 : index
    %c0_35 = arith.constant 0 : index
    %40 = vector.load %arg5[%c0_33, %c0_34, %c0_35] : memref<2x16x128xf32, #tpu.memory_space<vmem>>, vector<1x16x128xf32>
    %41 = vector.shape_cast %40 : vector<1x16x128xf32> to vector<16x128xf32>
    %42 = vector.shape_cast %39 : vector<16x128xf32> to vector<1x16x128xf32>
    tpu.vector_store %arg5[%c0_33, %c0_34, %c0_35], %42 {strides = array<i32>} : memref<2x16x128xf32, #tpu.memory_space<vmem>>, vector<1x16x128xf32>,
    %cst_36 = arith.constant dense<0.000000e+00> : vector<128xf32>
    %43 = vector.multi_reduction <add>, %39, %cst_36 [0] : vector<16x128xf32> to vector<128xf32>
    %44 = vector.shape_cast %43 : vector<128xf32> to vector<1x128xf32>
    %45 = arith.addf %37, %44 : vector<1x128xf32>
    %46 = arith.mulf %39, %39 : vector<16x128xf32>
    %cst_37 = arith.constant dense<0.000000e+00> : vector<128xf32>
    %47 = vector.multi_reduction <add>, %46, %cst_37 [0] : vector<16x128xf32> to vector<128xf32>
    %48 = vector.shape_cast %47 : vector<128xf32> to vector<1x128xf32>
    %49 = arith.addf %38, %48 : vector<1x128xf32>
    %50 = vector.extract_strided_slice %36 {offsets = [18, 0], sizes = [16, 128], strides = [1, 1]} : vector<34x128xf32> to vector<16x128xf32>
    %c1_38 = arith.constant 1 : index
    %c0_39 = arith.constant 0 : index
    %c0_40 = arith.constant 0 : index
    %51 = vector.load %arg5[%c1_38, %c0_39, %c0_40] : memref<2x16x128xf32, #tpu.memory_space<vmem>>, vector<1x16x128xf32>
    %52 = vector.shape_cast %51 : vector<1x16x128xf32> to vector<16x128xf32>
    %53 = vector.shape_cast %50 : vector<16x128xf32> to vector<1x16x128xf32>
    tpu.vector_store %arg5[%c1_38, %c0_39, %c0_40], %53 {strides = array<i32>} : memref<2x16x128xf32, #tpu.memory_space<vmem>>, vector<1x16x128xf32>,
    %cst_41 = arith.constant dense<0.000000e+00> : vector<128xf32>
    %54 = vector.multi_reduction <add>, %50, %cst_41 [0] : vector<16x128xf32> to vector<128xf32>
    %55 = vector.shape_cast %54 : vector<128xf32> to vector<1x128xf32>
    %56 = arith.addf %45, %55 : vector<1x128xf32>
    %57 = arith.mulf %50, %50 : vector<16x128xf32>
    %cst_42 = arith.constant dense<0.000000e+00> : vector<128xf32>
    %58 = vector.multi_reduction <add>, %57, %cst_42 [0] : vector<16x128xf32> to vector<128xf32>
    %59 = vector.shape_cast %58 : vector<128xf32> to vector<1x128xf32>
    %60 = arith.addf %49, %59 : vector<1x128xf32>
    %61 = vector.shape_cast %56 : vector<1x128xf32> to vector<1x1x128xf32>
    %c0_43 = arith.constant 0 : index
    %c0_44 = arith.constant 0 : index
    %c0_45 = arith.constant 0 : index
    %62 = vector.load %arg6[%c0_43, %c0_44, %c0_45] : memref<1x1x128xf32, #tpu.memory_space<vmem>>, vector<1x1x128xf32>
    tpu.vector_store %arg6[%c0_43, %c0_44, %c0_45], %61 {strides = array<i32>} : memref<1x1x128xf32, #tpu.memory_space<vmem>>, vector<1x1x128xf32>,
    %63 = vector.shape_cast %60 : vector<1x128xf32> to vector<1x1x128xf32>
    %c0_46 = arith.constant 0 : index
    %c0_47 = arith.constant 0 : index
    %c0_48 = arith.constant 0 : index
    %64 = vector.load %arg7[%c0_46, %c0_47, %c0_48] : memref<1x1x128xf32, #tpu.memory_space<vmem>>, vector<1x1x128xf32>
    tpu.vector_store %arg7[%c0_46, %c0_47, %c0_48], %63 {strides = array<i32>} : memref<1x1x128xf32, #tpu.memory_space<vmem>>, vector<1x1x128xf32>,
    return
  }
  func.func @transform_0(%arg0: i32) -> (i32, i32, i32) {
    %c0_i32 = arith.constant 0 : i32
    %c0_i32_0 = arith.constant 0 : i32
    %c0_i32_1 = arith.constant 0 : i32
    return %arg0, %c0_i32, %c0_i32_0 : i32, i32, i32
  }
  func.func @transform_1(%arg0: i32) -> (i32, i32) {
    %c0_i32 = arith.constant 0 : i32
    %c0_i32_0 = arith.constant 0 : i32
    %c0_i32_1 = arith.constant 0 : i32
    return %c0_i32, %c0_i32_0 : i32, i32
  }
  func.func @transform_2(%arg0: i32) -> (i32, i32) {
    %c0_i32 = arith.constant 0 : i32
    %c0_i32_0 = arith.constant 0 : i32
    %c0_i32_1 = arith.constant 0 : i32
    return %c0_i32, %c0_i32_0 : i32, i32
  }
  func.func @transform_3(%arg0: i32) -> (i32, i32, i32) {
    %c0_i32 = arith.constant 0 : i32
    %c0_i32_0 = arith.constant 0 : i32
    %c0_i32_1 = arith.constant 0 : i32
    %c0_i32_2 = arith.constant 0 : i32
    return %c0_i32, %c0_i32_0, %c0_i32_1 : i32, i32, i32
  }
  func.func @transform_4(%arg0: i32) -> (i32, i32, i32) {
    %c0_i32 = arith.constant 0 : i32
    %c0_i32_0 = arith.constant 0 : i32
    %c0_i32_1 = arith.constant 0 : i32
    return %arg0, %c0_i32, %c0_i32_0 : i32, i32, i32
  }
  func.func @transform_5(%arg0: i32) -> (i32, i32, i32) {
    %c0_i32 = arith.constant 0 : i32
    %c0_i32_0 = arith.constant 0 : i32
    %c0_i32_1 = arith.constant 0 : i32
    return %arg0, %c0_i32, %c0_i32_0 : i32, i32, i32
  }
  func.func @transform_6(%arg0: i32) -> (i32, i32, i32) {
    %c0_i32 = arith.constant 0 : i32
    %c0_i32_0 = arith.constant 0 : i32
    %c0_i32_1 = arith.constant 0 : i32
    return %arg0, %c0_i32, %c0_i32_0 : i32, i32, i32
  }
}

module attributes {stable_mosaic.version = 11 : i64} {
  func.func @_fused_affine_conv_stats_kernel(%arg0: i32, %arg1: memref<2x16x128xf32, #tpu.memory_space<vmem>>, %arg2: memref<1x128xf32, #tpu.memory_space<vmem>>, %arg3: memref<1x128xf32, #tpu.memory_space<vmem>>, %arg4: memref<3x128x128xbf16, #tpu.memory_space<vmem>>, %arg5: memref<2x16x128xf32, #tpu.memory_space<vmem>>, %arg6: memref<1x1x128xf32, #tpu.memory_space<vmem>>, %arg7: memref<1x1x128xf32, #tpu.memory_space<vmem>>, %arg8: memref<36x128xbf16, #tpu.memory_space<vmem>>) attributes {dimension_semantics = [#tpu.dimension_semantics<parallel>], iteration_bounds = array<i64: 1>, scalar_prefetch = 0 : i64, scratch_operands = 1 : i64, tpu.core_type = #tpu.core_type<tc>, window_params = [{transform_indices = @transform_0, window_bounds = array<i64: 2, 16, 128>}, {pipeline_mode = #tpu.pipeline_mode<synchronous>, transform_indices = @transform_1, window_bounds = array<i64: 1, 128>}, {pipeline_mode = #tpu.pipeline_mode<synchronous>, transform_indices = @transform_2, window_bounds = array<i64: 1, 128>}, {pipeline_mode = #tpu.pipeline_mode<synchronous>, transform_indices = @transform_3, window_bounds = array<i64: 3, 128, 128>}, {transform_indices = @transform_4, window_bounds = array<i64: 2, 16, 128>}, {transform_indices = @transform_5, window_bounds = array<i64: 1, 1, 128>}, {transform_indices = @transform_6, window_bounds = array<i64: 1, 1, 128>}]} {
    %c0 = arith.constant 0 : index
    %c0_0 = arith.constant 0 : index
    %c0_1 = arith.constant 0 : index
    %0 = vector.load %arg1[%c0, %c0_0, %c0_1] : memref<2x16x128xf32, #tpu.memory_space<vmem>>, vector<2x16x128xf32>
    %c0_2 = arith.constant 0 : index
    %c0_3 = arith.constant 0 : index
    %1 = vector.load %arg2[%c0_2, %c0_3] : memref<1x128xf32, #tpu.memory_space<vmem>>, vector<1x128xf32>
    %2 = vector.shape_cast %1 : vector<1x128xf32> to vector<1x1x128xf32>
    %3 = vector.broadcast %2 : vector<1x1x128xf32> to vector<2x16x128xf32>
    %4 = arith.mulf %0, %3 : vector<2x16x128xf32>
    %c0_4 = arith.constant 0 : index
    %c0_5 = arith.constant 0 : index
    %5 = vector.load %arg3[%c0_4, %c0_5] : memref<1x128xf32, #tpu.memory_space<vmem>>, vector<1x128xf32>
    %6 = vector.shape_cast %5 : vector<1x128xf32> to vector<1x1x128xf32>
    %7 = vector.broadcast %6 : vector<1x1x128xf32> to vector<2x16x128xf32>
    %8 = arith.addf %4, %7 : vector<2x16x128xf32>
    %cst = arith.constant 0.000000e+00 : f32
    %9 = vector.broadcast %cst : f32 to vector<2x16x128xf32>
    %10 = arith.maximumf %8, %9 : vector<2x16x128xf32>
    %11 = arith.truncf %10 : vector<2x16x128xf32> to vector<2x16x128xbf16>
    %cst_6 = arith.constant 0.000000e+00 : bf16
    %12 = vector.broadcast %cst_6 : bf16 to vector<1x128xbf16>
    %c0_7 = arith.constant 0 : index
    %c0_8 = arith.constant 0 : index
    %13 = vector.load %arg8[%c0_7, %c0_8] : memref<36x128xbf16, #tpu.memory_space<vmem>>, vector<1x128xbf16>
    tpu.vector_store %arg8[%c0_7, %c0_8], %12 {strides = array<i32>} : memref<36x128xbf16, #tpu.memory_space<vmem>>, vector<1x128xbf16>,
    %14 = vector.extract_strided_slice %11 {offsets = [0, 0, 0], sizes = [1, 16, 128], strides = [1, 1, 1]} : vector<2x16x128xbf16> to vector<1x16x128xbf16>
    %15 = vector.shape_cast %14 : vector<1x16x128xbf16> to vector<16x128xbf16>
    %c1 = arith.constant 1 : index
    %c0_9 = arith.constant 0 : index
    %16 = vector.load %arg8[%c1, %c0_9] : memref<36x128xbf16, #tpu.memory_space<vmem>>, vector<16x128xbf16>
    tpu.vector_store %arg8[%c1, %c0_9], %15 {strides = array<i32>} : memref<36x128xbf16, #tpu.memory_space<vmem>>, vector<16x128xbf16>,
    %c17 = arith.constant 17 : index
    %c0_10 = arith.constant 0 : index
    %17 = vector.load %arg8[%c17, %c0_10] : memref<36x128xbf16, #tpu.memory_space<vmem>>, vector<1x128xbf16>
    tpu.vector_store %arg8[%c17, %c0_10], %12 {strides = array<i32>} : memref<36x128xbf16, #tpu.memory_space<vmem>>, vector<1x128xbf16>,
    %c18 = arith.constant 18 : index
    %c0_11 = arith.constant 0 : index
    %18 = vector.load %arg8[%c18, %c0_11] : memref<36x128xbf16, #tpu.memory_space<vmem>>, vector<1x128xbf16>
    tpu.vector_store %arg8[%c18, %c0_11], %12 {strides = array<i32>} : memref<36x128xbf16, #tpu.memory_space<vmem>>, vector<1x128xbf16>,
    %19 = vector.extract_strided_slice %11 {offsets = [1, 0, 0], sizes = [1, 16, 128], strides = [1, 1, 1]} : vector<2x16x128xbf16> to vector<1x16x128xbf16>
    %20 = vector.shape_cast %19 : vector<1x16x128xbf16> to vector<16x128xbf16>
    %c19 = arith.constant 19 : index
    %c0_12 = arith.constant 0 : index
    %21 = vector.load %arg8[%c19, %c0_12] : memref<36x128xbf16, #tpu.memory_space<vmem>>, vector<16x128xbf16>
    tpu.vector_store %arg8[%c19, %c0_12], %20 {strides = array<i32>} : memref<36x128xbf16, #tpu.memory_space<vmem>>, vector<16x128xbf16>,
    %c35 = arith.constant 35 : index
    %c0_13 = arith.constant 0 : index
    %22 = vector.load %arg8[%c35, %c0_13] : memref<36x128xbf16, #tpu.memory_space<vmem>>, vector<1x128xbf16>
    tpu.vector_store %arg8[%c35, %c0_13], %12 {strides = array<i32>} : memref<36x128xbf16, #tpu.memory_space<vmem>>, vector<1x128xbf16>,
    %cst_14 = arith.constant 0.000000e+00 : f32
    %23 = vector.broadcast %cst_14 : f32 to vector<34x128xf32>
    %c0_15 = arith.constant 0 : index
    %c0_16 = arith.constant 0 : index
    %24 = vector.load %arg8[%c0_15, %c0_16] : memref<36x128xbf16, #tpu.memory_space<vmem>>, vector<34x128xbf16>
    %c0_17 = arith.constant 0 : index
    %c0_18 = arith.constant 0 : index
    %c0_19 = arith.constant 0 : index
    %25 = vector.load %arg4[%c0_17, %c0_18, %c0_19] : memref<3x128x128xbf16, #tpu.memory_space<vmem>>, vector<1x128x128xbf16>
    %26 = vector.shape_cast %25 : vector<1x128x128xbf16> to vector<128x128xbf16>
    %cst_20 = arith.constant dense<0.000000e+00> : vector<34x128xf32>
    %27 = tpu.matmul %24, %26, %cst_20 {dimension_numbers = #tpu.dot_dimension_numbers<[1], [0], [0], [1], [0, 0, 1, 1], [], []>} : vector<34x128xbf16>, vector<128x128xbf16>, vector<34x128xf32> -> vector<34x128xf32>
    %28 = arith.addf %23, %27 : vector<34x128xf32>
    %c1_21 = arith.constant 1 : index
    %c0_22 = arith.constant 0 : index
    %29 = vector.load %arg8[%c1_21, %c0_22] : memref<36x128xbf16, #tpu.memory_space<vmem>>, vector<34x128xbf16>
    %c1_23 = arith.constant 1 : index
    %c0_24 = arith.constant 0 : index
    %c0_25 = arith.constant 0 : index
    %30 = vector.load %arg4[%c1_23, %c0_24, %c0_25] : memref<3x128x128xbf16, #tpu.memory_space<vmem>>, vector<1x128x128xbf16>
    %31 = vector.shape_cast %30 : vector<1x128x128xbf16> to vector<128x128xbf16>
    %cst_26 = arith.constant dense<0.000000e+00> : vector<34x128xf32>
    %32 = tpu.matmul %29, %31, %cst_26 {dimension_numbers = #tpu.dot_dimension_numbers<[1], [0], [0], [1], [0, 0, 1, 1], [], []>} : vector<34x128xbf16>, vector<128x128xbf16>, vector<34x128xf32> -> vector<34x128xf32>
    %33 = arith.addf %28, %32 : vector<34x128xf32>
    %c2 = arith.constant 2 : index
    %c0_27 = arith.constant 0 : index
    %34 = vector.load %arg8[%c2, %c0_27] : memref<36x128xbf16, #tpu.memory_space<vmem>>, vector<34x128xbf16>
    %c2_28 = arith.constant 2 : index
    %c0_29 = arith.constant 0 : index
    %c0_30 = arith.constant 0 : index
    %35 = vector.load %arg4[%c2_28, %c0_29, %c0_30] : memref<3x128x128xbf16, #tpu.memory_space<vmem>>, vector<1x128x128xbf16>
    %36 = vector.shape_cast %35 : vector<1x128x128xbf16> to vector<128x128xbf16>
    %cst_31 = arith.constant dense<0.000000e+00> : vector<34x128xf32>
    %37 = tpu.matmul %34, %36, %cst_31 {dimension_numbers = #tpu.dot_dimension_numbers<[1], [0], [0], [1], [0, 0, 1, 1], [], []>} : vector<34x128xbf16>, vector<128x128xbf16>, vector<34x128xf32> -> vector<34x128xf32>
    %38 = arith.addf %33, %37 : vector<34x128xf32>
    %cst_32 = arith.constant 0.000000e+00 : f32
    %39 = vector.broadcast %cst_32 : f32 to vector<1x128xf32>
    %cst_33 = arith.constant 0.000000e+00 : f32
    %40 = vector.broadcast %cst_33 : f32 to vector<1x128xf32>
    %41 = vector.extract_strided_slice %38 {offsets = [0, 0], sizes = [16, 128], strides = [1, 1]} : vector<34x128xf32> to vector<16x128xf32>
    %c0_34 = arith.constant 0 : index
    %c0_35 = arith.constant 0 : index
    %c0_36 = arith.constant 0 : index
    %42 = vector.load %arg5[%c0_34, %c0_35, %c0_36] : memref<2x16x128xf32, #tpu.memory_space<vmem>>, vector<1x16x128xf32>
    %43 = vector.shape_cast %42 : vector<1x16x128xf32> to vector<16x128xf32>
    %44 = vector.shape_cast %41 : vector<16x128xf32> to vector<1x16x128xf32>
    tpu.vector_store %arg5[%c0_34, %c0_35, %c0_36], %44 {strides = array<i32>} : memref<2x16x128xf32, #tpu.memory_space<vmem>>, vector<1x16x128xf32>,
    %cst_37 = arith.constant dense<0.000000e+00> : vector<128xf32>
    %45 = vector.multi_reduction <add>, %41, %cst_37 [0] : vector<16x128xf32> to vector<128xf32>
    %46 = vector.shape_cast %45 : vector<128xf32> to vector<1x128xf32>
    %47 = arith.addf %39, %46 : vector<1x128xf32>
    %48 = arith.mulf %41, %41 : vector<16x128xf32>
    %cst_38 = arith.constant dense<0.000000e+00> : vector<128xf32>
    %49 = vector.multi_reduction <add>, %48, %cst_38 [0] : vector<16x128xf32> to vector<128xf32>
    %50 = vector.shape_cast %49 : vector<128xf32> to vector<1x128xf32>
    %51 = arith.addf %40, %50 : vector<1x128xf32>
    %52 = vector.extract_strided_slice %38 {offsets = [18, 0], sizes = [16, 128], strides = [1, 1]} : vector<34x128xf32> to vector<16x128xf32>
    %c1_39 = arith.constant 1 : index
    %c0_40 = arith.constant 0 : index
    %c0_41 = arith.constant 0 : index
    %53 = vector.load %arg5[%c1_39, %c0_40, %c0_41] : memref<2x16x128xf32, #tpu.memory_space<vmem>>, vector<1x16x128xf32>
    %54 = vector.shape_cast %53 : vector<1x16x128xf32> to vector<16x128xf32>
    %55 = vector.shape_cast %52 : vector<16x128xf32> to vector<1x16x128xf32>
    tpu.vector_store %arg5[%c1_39, %c0_40, %c0_41], %55 {strides = array<i32>} : memref<2x16x128xf32, #tpu.memory_space<vmem>>, vector<1x16x128xf32>,
    %cst_42 = arith.constant dense<0.000000e+00> : vector<128xf32>
    %56 = vector.multi_reduction <add>, %52, %cst_42 [0] : vector<16x128xf32> to vector<128xf32>
    %57 = vector.shape_cast %56 : vector<128xf32> to vector<1x128xf32>
    %58 = arith.addf %47, %57 : vector<1x128xf32>
    %59 = arith.mulf %52, %52 : vector<16x128xf32>
    %cst_43 = arith.constant dense<0.000000e+00> : vector<128xf32>
    %60 = vector.multi_reduction <add>, %59, %cst_43 [0] : vector<16x128xf32> to vector<128xf32>
    %61 = vector.shape_cast %60 : vector<128xf32> to vector<1x128xf32>
    %62 = arith.addf %51, %61 : vector<1x128xf32>
    %63 = vector.shape_cast %58 : vector<1x128xf32> to vector<1x1x128xf32>
    %c0_44 = arith.constant 0 : index
    %c0_45 = arith.constant 0 : index
    %c0_46 = arith.constant 0 : index
    %64 = vector.load %arg6[%c0_44, %c0_45, %c0_46] : memref<1x1x128xf32, #tpu.memory_space<vmem>>, vector<1x1x128xf32>
    tpu.vector_store %arg6[%c0_44, %c0_45, %c0_46], %63 {strides = array<i32>} : memref<1x1x128xf32, #tpu.memory_space<vmem>>, vector<1x1x128xf32>,
    %65 = vector.shape_cast %62 : vector<1x128xf32> to vector<1x1x128xf32>
    %c0_47 = arith.constant 0 : index
    %c0_48 = arith.constant 0 : index
    %c0_49 = arith.constant 0 : index
    %66 = vector.load %arg7[%c0_47, %c0_48, %c0_49] : memref<1x1x128xf32, #tpu.memory_space<vmem>>, vector<1x1x128xf32>
    tpu.vector_store %arg7[%c0_47, %c0_48, %c0_49], %65 {strides = array<i32>} : memref<1x1x128xf32, #tpu.memory_space<vmem>>, vector<1x1x128xf32>,
    return
  }
  func.func @transform_0(%arg0: i32) -> (i32, i32, i32) {
    %c0_i32 = arith.constant 0 : i32
    %c0_i32_0 = arith.constant 0 : i32
    %c0_i32_1 = arith.constant 0 : i32
    return %arg0, %c0_i32, %c0_i32_0 : i32, i32, i32
  }
  func.func @transform_1(%arg0: i32) -> (i32, i32) {
    %c0_i32 = arith.constant 0 : i32
    %c0_i32_0 = arith.constant 0 : i32
    %c0_i32_1 = arith.constant 0 : i32
    return %c0_i32, %c0_i32_0 : i32, i32
  }
  func.func @transform_2(%arg0: i32) -> (i32, i32) {
    %c0_i32 = arith.constant 0 : i32
    %c0_i32_0 = arith.constant 0 : i32
    %c0_i32_1 = arith.constant 0 : i32
    return %c0_i32, %c0_i32_0 : i32, i32
  }
  func.func @transform_3(%arg0: i32) -> (i32, i32, i32) {
    %c0_i32 = arith.constant 0 : i32
    %c0_i32_0 = arith.constant 0 : i32
    %c0_i32_1 = arith.constant 0 : i32
    %c0_i32_2 = arith.constant 0 : i32
    return %c0_i32, %c0_i32_0, %c0_i32_1 : i32, i32, i32
  }
  func.func @transform_4(%arg0: i32) -> (i32, i32, i32) {
    %c0_i32 = arith.constant 0 : i32
    %c0_i32_0 = arith.constant 0 : i32
    %c0_i32_1 = arith.constant 0 : i32
    return %arg0, %c0_i32, %c0_i32_0 : i32, i32, i32
  }
  func.func @transform_5(%arg0: i32) -> (i32, i32, i32) {
    %c0_i32 = arith.constant 0 : i32
    %c0_i32_0 = arith.constant 0 : i32
    %c0_i32_1 = arith.constant 0 : i32
    return %arg0, %c0_i32, %c0_i32_0 : i32, i32, i32
  }
  func.func @transform_6(%arg0: i32) -> (i32, i32, i32) {
    %c0_i32 = arith.constant 0 : i32
    %c0_i32_0 = arith.constant 0 : i32
    %c0_i32_1 = arith.constant 0 : i32
    return %arg0, %c0_i32, %c0_i32_0 : i32, i32, i32
  }
}

module attributes {stable_mosaic.version = 11 : i64} {
  func.func @_bn_relu_kernel(%arg0: i32, %arg1: memref<2x16x128xf32, #tpu.memory_space<vmem>>, %arg2: memref<1x128xf32, #tpu.memory_space<vmem>>, %arg3: memref<1x128xf32, #tpu.memory_space<vmem>>, %arg4: memref<2x16x128xf32, #tpu.memory_space<vmem>>) attributes {dimension_semantics = [#tpu.dimension_semantics<arbitrary>], iteration_bounds = array<i64: 1>, scalar_prefetch = 0 : i64, scratch_operands = 0 : i64, tpu.core_type = #tpu.core_type<tc>, window_params = [{pipeline_mode = #tpu.pipeline_mode<synchronous>, transform_indices = @transform_0, window_bounds = array<i64: 2, 16, 128>}, {pipeline_mode = #tpu.pipeline_mode<synchronous>, transform_indices = @transform_1, window_bounds = array<i64: 1, 128>}, {pipeline_mode = #tpu.pipeline_mode<synchronous>, transform_indices = @transform_2, window_bounds = array<i64: 1, 128>}, {pipeline_mode = #tpu.pipeline_mode<synchronous>, transform_indices = @transform_3, window_bounds = array<i64: 2, 16, 128>}]} {
    %c0 = arith.constant 0 : index
    %c0_0 = arith.constant 0 : index
    %c0_1 = arith.constant 0 : index
    %0 = vector.load %arg1[%c0, %c0_0, %c0_1] : memref<2x16x128xf32, #tpu.memory_space<vmem>>, vector<2x16x128xf32>
    %c0_2 = arith.constant 0 : index
    %c0_3 = arith.constant 0 : index
    %1 = vector.load %arg2[%c0_2, %c0_3] : memref<1x128xf32, #tpu.memory_space<vmem>>, vector<1x128xf32>
    %2 = vector.shape_cast %1 : vector<1x128xf32> to vector<1x1x128xf32>
    %3 = vector.broadcast %2 : vector<1x1x128xf32> to vector<2x16x128xf32>
    %4 = arith.mulf %0, %3 : vector<2x16x128xf32>
    %c0_4 = arith.constant 0 : index
    %c0_5 = arith.constant 0 : index
    %5 = vector.load %arg3[%c0_4, %c0_5] : memref<1x128xf32, #tpu.memory_space<vmem>>, vector<1x128xf32>
    %6 = vector.shape_cast %5 : vector<1x128xf32> to vector<1x1x128xf32>
    %7 = vector.broadcast %6 : vector<1x1x128xf32> to vector<2x16x128xf32>
    %8 = arith.addf %4, %7 : vector<2x16x128xf32>
    %cst = arith.constant 0.000000e+00 : f32
    %9 = vector.broadcast %cst : f32 to vector<2x16x128xf32>
    %10 = arith.maximumf %8, %9 : vector<2x16x128xf32>
    %c0_6 = arith.constant 0 : index
    %c0_7 = arith.constant 0 : index
    %c0_8 = arith.constant 0 : index
    %11 = vector.load %arg4[%c0_6, %c0_7, %c0_8] : memref<2x16x128xf32, #tpu.memory_space<vmem>>, vector<2x16x128xf32>
    tpu.vector_store %arg4[%c0_6, %c0_7, %c0_8], %10 {strides = array<i32>} : memref<2x16x128xf32, #tpu.memory_space<vmem>>, vector<2x16x128xf32>,
    return
  }
  func.func @transform_0(%arg0: i32) -> (i32, i32, i32) {
    %c0_i32 = arith.constant 0 : i32
    %c0_i32_0 = arith.constant 0 : i32
    %c0_i32_1 = arith.constant 0 : i32
    %c0_i32_2 = arith.constant 0 : i32
    return %c0_i32, %c0_i32_0, %c0_i32_1 : i32, i32, i32
  }
  func.func @transform_1(%arg0: i32) -> (i32, i32) {
    %c0_i32 = arith.constant 0 : i32
    %c0_i32_0 = arith.constant 0 : i32
    %c0_i32_1 = arith.constant 0 : i32
    return %c0_i32, %c0_i32_0 : i32, i32
  }
  func.func @transform_2(%arg0: i32) -> (i32, i32) {
    %c0_i32 = arith.constant 0 : i32
    %c0_i32_0 = arith.constant 0 : i32
    %c0_i32_1 = arith.constant 0 : i32
    return %c0_i32, %c0_i32_0 : i32, i32
  }
  func.func @transform_3(%arg0: i32) -> (i32, i32, i32) {
    %c0_i32 = arith.constant 0 : i32
    %c0_i32_0 = arith.constant 0 : i32
    %c0_i32_1 = arith.constant 0 : i32
    %c0_i32_2 = arith.constant 0 : i32
    return %c0_i32, %c0_i32_0, %c0_i32_1 : i32, i32, i32
  }
}

</mosaic_0001>

<bundles_post_ra>
// kernel: tile.38
= control target key start
LH: loop header
LB: loop body
LE: loop exit
PB: predicated region body
PF: predicated region fallthrough
CT: control target
= control target key end

     0   :  { %s28_s0 = inlined_call_operand.vmem [shape: f32[8], index: 0, kind: input, shape index: {}]   ;;  %s29_s1 = inlined_call_operand.vmem [shape: f32[16,8], index: 1, kind: output, shape index: {}]  }
   0x1   :  { %v4_v0 = vld [vmem:[%s28_s0] ss:$0 sm:$0xff] }
   0x2   :  { %5 = vst [vmem:[%s29_s1] sm:$0xff] %v4_v0  ;;  %8 = vst [vmem:[%s29_s1 + $0x8] sm:$0xff] %v4_v0 }

// kernel: tile.39
= control target key start
LH: loop header
LB: loop body
LE: loop exit
PB: predicated region body
PF: predicated region fallthrough
CT: control target
= control target key end

     0   :  { %s133_s10 = smov 120   ;;  %s134_s11 = smov 104   ;;  %vm3_vm0 = vcmask 64512   ;;  %vm9_vm1 = vcmask 1048512   ;;  %vm15_vm2 = vcmask 982912   ;;  %vm21_vm3 = vcmask 917312   ;;  %s209_s0 = inlined_call_operand.vmem [shape: f32[16,8], index: 0, kind: input, shape index: {}]   ;;  %s210_s1 = inlined_call_operand.vmem [shape: f32[1,128], index: 1, kind: output, shape index: {}]  }
   0x1   :  { %v103_v0 = vld [vmem:[%s209_s0 + $0xf] sm:$0x1]   ;;  %v105_v1 = vld [vmem:[%s209_s0 + $0xd] sm:$0x1]   ;;  %v104_v2 = vld [vmem:[%s209_s0 + $0xe] sm:$0x1]  }
   0x2   :  { %7 = vrot.lane.b32.xlu0 %v103_v0, %s133_s10  ;;  %19 = vrot.lane.b32.xlu1 %v105_v1, %s134_s11  ;;  %v106_v3 = vld [vmem:[%s209_s0 + $0xc] sm:$0x1]   ;;  %s135_s16 = smov 112   ;;  %s136_s17 = smov 96   ;;  %v107_v4 = vld [vmem:[%s209_s0 + $0xb] sm:$0x1]  }
   0x3   :  { %v108_v5 = vld [vmem:[%s209_s0 + $0xa] sm:$0x1]   ;;  %v2_v6 = vld [vmem:[%s209_s0] sm:$0x1]   ;;  %s137_s24 = smov 88   ;;  %s138_s25 = smov 80  }
   0x4   :  { %4 = vst.msk [vmem:[#allocation0] sm:$0x1] %vm3_vm0, %v2_v6   ;;  %v109_v7 = vld [vmem:[%s209_s0 + $0x9] sm:$0x1]   ;;  %v110_v8 = vld [vmem:[%s209_s0 + $0x8] sm:$0x1]  }
   0x5   :  { %s139_s30 = smov 72   ;;  %s140_s2 = smov 64   ;;  %v111_v9 = vld [vmem:[%s209_s0 + $0x7] sm:$0x1]   ;;  %v112_v10 = vld [vmem:[%s209_s0 + $0x6] sm:$0x1]  }
   0x6   :  { %13 = vrot.lane.b32.xlu0 %v104_v2, %s135_s16  ;;  %25 = vrot.lane.b32.xlu1 %v106_v3, %s136_s17  ;;  %s141_s7 = smov 56   ;;  %s142_s8 = smov 48   ;;  %v113_v11 = vld [vmem:[%s209_s0 + $0x5] sm:$0x1]   ;;  %v114_v12 = vld [vmem:[%s209_s0 + $0x4] sm:$0x1]  }
   0x7   :  { %s143_s13 = smov 40   ;;  %s144_s14 = smov 32   ;;  %v115_v13 = vld [vmem:[%s209_s0 + $0x3] sm:$0x1]   ;;  %v116_v14 = vld [vmem:[%s209_s0 + $0x2] sm:$0x1]  }
   0x8   :  { %s145_s19 = smov 24   ;;  %s146_s20 = smov 16   ;;  %v117_v15 = vld [vmem:[%s209_s0 + $0x1] sm:$0x1]   ;;  %vm27_vm4 = vcmask 851712   ;;  %vm33_vm5 = vcmask 786112  }
   0x9   :  { %s147_s0 = smov 8   ;;  %vm39_vm6 = vcmask 720512   ;;  %vm45_vm7 = vcmask 654912   ;;  %vm51_vm8 = vcmask 589312   ;;  %vm57_vm9 = vcmask 523712  }
   0xa   :  { %31 = vrot.lane.b32.xlu0 %v107_v4, %s137_s24  ;;  %37 = vrot.lane.b32.xlu1 %v108_v5, %s138_s25  ;;  %vm63_vm10 = vcmask 458112   ;;  %vm69_vm11 = vcmask 392512   ;;  %vm75_vm12 = vcmask 326912   ;;  %vm81_vm13 = vcmask 261312  }
   0xb   :  { %vm87_vm14 = vcmask 195712   ;;  %vm93_vm15 = vcmask 130112  }
   0xe   :  { %43 = vrot.lane.b32.xlu0 %v109_v7, %s139_s30  ;;  %49 = vrot.lane.b32.xlu1 %v110_v8, %s140_s2 }
  0x12   :  { %55 = vrot.lane.b32.xlu0 %v111_v9, %s141_s7  ;;  %61 = vrot.lane.b32.xlu1 %v112_v10, %s142_s8 }
  0x16   :  { %67 = vrot.lane.b32.xlu0 %v113_v11, %s143_s13  ;;  %73 = vrot.lane.b32.xlu1 %v114_v12, %s144_s14 }
  0x1a   :  { %79 = vrot.lane.b32.xlu0 %v115_v13, %s145_s19  ;;  %85 = vrot.lane.b32.xlu1 %v116_v14, %s146_s20 }
  0x1e   :  { %91 = vrot.lane.b32.xlu0 %v117_v15, %s147_s0 }
  0x74   :  { %v8_v16 = vpop.permute.xlu0 %7   ;;  %v20_v17 = vpop.permute.xlu1 %19  }
  0x75   :  { %10 = vst.msk [vmem:[#allocation0] sm:$0x1] %vm9_vm1, %v8_v16  }
  0x78   :  { %v14_v18 = vpop.permute.xlu0 %13   ;;  %v26_v19 = vpop.permute.xlu1 %25  }
  0x79   :  { %16 = vst.msk [vmem:[#allocation0] sm:$0x1] %vm15_vm2, %v14_v18  }
  0x7a   :  { %22 = vst.msk [vmem:[#allocation0] sm:$0x1] %vm21_vm3, %v20_v17  }
  0x7b   :  { %28 = vst.msk [vmem:[#allocation0] sm:$0x1] %vm27_vm4, %v26_v19  }
  0x7c   :  { %v32_v20 = vpop.permute.xlu0 %31   ;;  %v38_v21 = vpop.permute.xlu1 %37  }
  0x7d   :  { %34 = vst.msk [vmem:[#allocation0] sm:$0x1] %vm33_vm5, %v32_v20  }
  0x7e   :  { %40 = vst.msk [vmem:[#allocation0] sm:$0x1] %vm39_vm6, %v38_v21  }
  0x80   :  { %v44_v22 = vpop.permute.xlu0 %43   ;;  %v50_v23 = vpop.permute.xlu1 %49  }
  0x81   :  { %46 = vst.msk [vmem:[#allocation0] sm:$0x1] %vm45_vm7, %v44_v22  }
  0x82   :  { %52 = vst.msk [vmem:[#allocation0] sm:$0x1] %vm51_vm8, %v50_v23  }
  0x84   :  { %v56_v24 = vpop.permute.xlu0 %55   ;;  %v62_v25 = vpop.permute.xlu1 %61  }
  0x85   :  { %58 = vst.msk [vmem:[#allocation0] sm:$0x1] %vm57_vm9, %v56_v24  }
  0x86   :  { %64 = vst.msk [vmem:[#allocation0] sm:$0x1] %vm63_vm10, %v62_v25  }
  0x88   :  { %v68_v26 = vpop.permute.xlu0 %67   ;;  %v74_v27 = vpop.permute.xlu1 %73  }
  0x89   :  { %70 = vst.msk [vmem:[#allocation0] sm:$0x1] %vm69_vm11, %v68_v26  }
  0x8a   :  { %76 = vst.msk [vmem:[#allocation0] sm:$0x1] %vm75_vm12, %v74_v27  }
  0x8c   :  { %v80_v28 = vpop.permute.xlu0 %79   ;;  %v86_v29 = vpop.permute.xlu1 %85  }
  0x8d   :  { %82 = vst.msk [vmem:[#allocation0] sm:$0x1] %vm81_vm13, %v80_v28  }
  0x8e   :  { %88 = vst.msk [vmem:[#allocation0] sm:$0x1] %vm87_vm14, %v86_v29  }
  0x90   :  { %v92_v30 = vpop.permute.xlu0 %91  }
  0x91   :  { %94 = vst.msk [vmem:[#allocation0] sm:$0x1] %vm93_vm15, %v92_v30  }
  0x98   :  { %v99_v31 = vld [vmem:[#allocation0] sm:$0x1] }
  0x99   :  { %102 = vst [vmem:[%s210_s1] sm:$0x1] %v99_v31 }

// kernel: sphere_decoder.5
= control target key start
LH: loop header
LB: loop body
LE: loop exit
PB: predicated region body
PF: predicated region fallthrough
CT: control target
= control target key end

     0   :  { %v899_v0 = vmov 0.0   ;;  %vm900_vm0 = vmmov 0   ;;  %vm54_vm1 = vsmask.f32 256  ;;  %vm53_vm2 = vcmask 1040384   ;;  %s1177_s3 = inlined_call_operand.vmem [shape: bf16[3,128,128], index: 3, kind: input, shape index: {}]   ;;  %s1178_s0 = inlined_call_operand.vmem [shape: f32[2,16,128], index: 0, kind: input, shape index: {}]   ;;  %s1179_s1 = inlined_call_operand.vmem [shape: f32[1,128], index: 1, kind: input, shape index: {}]   ;;  %s1180_s2 = inlined_call_operand.vmem [shape: f32[1,128], index: 2, kind: input, shape index: {}]   ;;  %s1181_s4 = inlined_call_operand.vmem [shape: f32[2,16,128], index: 4, kind: output, shape index: {0}]   ;;  %s1182_s5 = inlined_call_operand.vmem [shape: f32[1,1,128], index: 5, kind: output, shape index: {1}]   ;;  %s1183_s6 = inlined_call_operand.vmem [shape: f32[1,1,128], index: 6, kind: output, shape index: {2}]  }
   0x1   :  { %796 = vmatprep.subr.bf16.mxu1 %v899_v0  ;;  %v870_v1 = vld [vmem:[%s1177_s3 + $0x38] sm:$0xff]   ;;  %768 = vmatprep.subr.bf16.mxu0 %v899_v0  ;;  %v871_v2 = vld [vmem:[%s1177_s3 + $0x30] sm:$0xff]   ;;  %v873_v5 = vld [vmem:[%s1177_s3 + $0x28] sm:$0xff]   ;;  %vm86_vm3 = vcmask 1043456   ;;  %vm100_vm5 = vcmask 1041409   ;;  %vm142_vm6 = vcmask 1041408  }
   0x2   :  { %812 = vmatprep.mubr.msk.bf16.mxu1 %vm900_vm0, %v899_v0  ;;  %784 = vmatprep.mubr.msk.bf16.mxu0 %vm900_vm0, %v899_v0  ;;  %v872_v3 = vld [vmem:[%s1177_s3 + $0x78] sm:$0xff]   ;;  %v874_v4 = vld [vmem:[%s1177_s3 + $0x70] sm:$0xff]   ;;  %v876_v6 = vld [vmem:[%s1177_s3 + $0x68] sm:$0xff]   ;;  %vm135_vm7 = vcmask 1043457   ;;  %vm101_vm8 = vsmask.f32 1280 }
   0x3   :  { %797 = vmatpush3.bf16.msra.mxu1 %v870_v1  ;;  %769 = vmatpush3.bf16.msra.mxu0 %v872_v3  ;;  %v875_v7 = vld [vmem:[%s1177_s3 + $0x20] sm:$0xff]   ;;  %v877_v9 = vld [vmem:[%s1177_s3 + $0x18] sm:$0xff]   ;;  %v22_v12 = vld [vmem:[%s1178_s0 + $0x8] sm:$0xff]  ;;  %vm64_vm10 = vsmask.f32 4368 }
   0x4   :  { %798 = vmatprep.subr.bf16.mxu1 %v899_v0  ;;  %770 = vmatprep.subr.bf16.mxu0 %v899_v0  ;;  %v878_v8 = vld [vmem:[%s1177_s3 + $0x60] sm:$0xff]   ;;  %v880_v10 = vld [vmem:[%s1177_s3 + $0x58] sm:$0xff]   ;;  %v23_v13 = vld [vmem:[%s1178_s0 + $0x10] sm:$0xff]  ;;  %vm87_vm11 = vsmask.f32 7938 }
   0x5   :  { %v21_v11 = vld [vmem:[%s1178_s0] sm:$0xff]  ;;  %v24_v14 = vld [vmem:[%s1178_s0 + $0x18] sm:$0xff]  ;;  %vm1000_vm4 = vmand %vm53_vm2, %vm54_vm1  ;;  %vm111_vm12 = vsmask.f32 5392  ;;  %vm136_vm15 = vsmask.f32 7942 }
   0x6   :  { %v661_v15 = vld [vmem:[%s1179_s1] ss:$0 sm:$0xff]  ;;  %v879_v23 = vld [vmem:[%s1177_s3 + $0x10] sm:$0xff]   ;;  %v881_v29 = vld [vmem:[%s1177_s3 + $0x8] sm:$0xff]  }
   0x7   :  { %799 = vmatpush3.bf16.msra.mxu1 %v871_v2  ;;  %771 = vmatpush3.bf16.msra.mxu0 %v874_v4  ;;  %v662_v16 = vld [vmem:[%s1180_s2] ss:$0 sm:$0xff]  ;;  %v32_v17 = vmul.f32 %v661_v15, %v21_v11  ;;  %v33_v18 = vmul.f32 %v661_v15, %v22_v12  ;;  %v34_v19 = vmul.f32 %v661_v15, %v23_v13  ;;  %v882_v30 = vld [vmem:[%s1177_s3 + $0x50] sm:$0xff]   ;;  %vm1019_vm9 = vmand %vm100_vm5, %vm101_vm8 }
   0x8   :  { %800 = vmatprep.subr.bf16.mxu1 %v899_v0  ;;  %772 = vmatprep.subr.bf16.mxu0 %v899_v0  ;;  %v35_v20 = vmul.f32 %v661_v15, %v24_v14  ;;  %v56_v22 = vld [vmem:[#allocation2] sm:$0x1]  ;;  %v103_v36 = vld [vmem:[#allocation2 + $0x8] sm:$0x2]  ;;  %vm1035_vm13 = vmor %vm54_vm1, %vm64_vm10 }
   0x9   :  { %v57_v24 = vsel %vm1000_vm4, 0, %v56_v22  ;;  %v43_v25 = vadd.f32 %v662_v16, %v32_v17  ;;  %v44_v26 = vadd.f32 %v662_v16, %v33_v18  ;;  %v45_v27 = vadd.f32 %v662_v16, %v34_v19  ;;  %v884_v41 = vld [vmem:[%s1177_s3 + $0x48] sm:$0xff]   ;;  %v883_v47 = vld [vmem:[%s1177_s3] sm:$0xff]   ;;  %vm1045_vm14 = vmand %vm86_vm3, %vm87_vm11 }
   0xa   :  { %v46_v28 = vadd.f32 %v662_v16, %v35_v20  ;;  %58 = vst [vmem:[#allocation2] sm:$0x1] %v57_v24  ;;  %v104_v42 = vsel %vm1019_vm9, 0, %v103_v36  ;;  %v93_v49 = vld [vmem:[#allocation2 + $0x8] sm:$0x1]  ;;  %v888_v50 = vld [vmem:[%s1177_s3 + $0x40] sm:$0xff]   ;;  %vm1051_vm1 = vmand %vm142_vm6, %vm101_vm8 }
   0xb   :  { %801 = vmatpush3.bf16.msra.mxu1 %v873_v5  ;;  %773 = vmatpush3.bf16.msra.mxu0 %v876_v6  ;;  %v47_v31 = vmax.f32 %v43_v25, 0.0  ;;  %v48_v32 = vmax.f32 %v44_v26, 0.0  ;;  %v49_v33 = vmax.f32 %v45_v27, 0.0  ;;  %105 = vst [vmem:[#allocation2 + $0x8] sm:$0x2] %v104_v42  ;;  %vm1058_vm3 = vmor %vm101_vm8, %vm111_vm12  ;;  %v887_v19 = vld [vmem:[%s1177_s3 + $0xb8] sm:$0xff]  }
   0xc   :  { %802 = vmatprep.subr.bf16.mxu1 %v899_v0  ;;  %774 = vmatprep.subr.bf16.mxu0 %v899_v0  ;;  %v50_v34 = vmax.f32 %v46_v28, 0.0  ;;  %vm1064_vm6 = vmand %vm135_vm7, %vm136_vm15  ;;  %v144_v12 = vld [vmem:[#allocation2 + $0x10] sm:$0x3]  ;;  %v892_v35 = vld [vmem:[%s1177_s3 + $0xa0] sm:$0xff]  }
   0xd   :  { %v731_v37 = vpack.c.bf16 %v47_v31, %v47_v31  ;;  %v732_v38 = vpack.c.bf16 %v48_v32, %v48_v32  ;;  %v733_v39 = vpack.c.bf16 %v49_v33, %v49_v33  ;;  %vm147_vm7 = vmand %vm100_vm5, %vm136_vm15  ;;  %v889_v27 = vld [vmem:[%s1177_s3 + $0xb0] sm:$0xff]   ;;  %v891_v31 = vld [vmem:[%s1177_s3 + $0xa8] sm:$0xff]   ;;  %vm465_vm5 = vcmask 1046528  }
   0xe   :  { %v734_v40 = vpack.c.bf16 %v50_v34, %v50_v34  ;;  %v894_v42 = vld [vmem:[%s1177_s3 + $0x98] sm:$0xff]   ;;  %v897_v48 = vld [vmem:[%s1177_s3 + $0x88] sm:$0xff]  }
   0xf   :  { %803 = vmatpush3.bf16.msra.mxu1 %v875_v7  ;;  %775 = vmatpush3.bf16.msra.mxu0 %v878_v8  ;;  %v67_v43 = vshrl.u32 %v731_v37, 16  ;;  %v70_v44 = vshll.u32 %v731_v37, 16  ;;  %v75_v45 = vshrl.u32 %v732_v38, 16  ;;  %v78_v46 = vshll.u32 %v732_v38, 16 }
  0x10   :  { %804 = vmatprep.subr.bf16.mxu1 %v899_v0  ;;  %776 = vmatprep.subr.bf16.mxu0 %v899_v0  ;;  %v114_v51 = vshrl.u32 %v733_v39, 16  ;;  %v117_v52 = vshll.u32 %v733_v39, 16  ;;  %v123_v53 = vshrl.u32 %v734_v40, 16  ;;  %v126_v54 = vshll.u32 %v734_v40, 16 }
  0x11   :  { %v69_v55 = vrot.slane %v67_v43, 7  ;;  %v77_v56 = vrot.slane %v75_v45, 7  ;;  %v89_v58 = vld [vmem:[#allocation2] sm:$0xf]  ;;  %v896_v45 = vld [vmem:[%s1177_s3 + $0x90] sm:$0xff]  }
  0x12   :  { %v116_v59 = vrot.slane %v114_v51, 6  ;;  %v119_v60 = vrot.slane %v117_v52, 7  ;;  %v125_v61 = vrot.slane %v123_v53, 6  ;;  %v128_v62 = vrot.slane %v126_v54, 7  ;;  %v138_v14 = vld [vmem:[#allocation2 + $0x8] sm:$0xe] }
  0x13   :  { %805 = vmatpush3.bf16.msra.mxu1 %v877_v9  ;;  %777 = vmatpush3.bf16.msra.mxu0 %v880_v10  ;;  %v72_v1 = vor.u32 %v70_v44, %v69_v55  ;;  %v73_v2 = vrot.slane %v69_v55, 4  ;;  %v80_v3 = vor.u32 %v78_v46, %v77_v56  ;;  %v82_v4 = vrot.slane %v77_v56, 4 }
  0x14   :  { %806 = vmatprep.subr.bf16.mxu1 %v899_v0  ;;  %778 = vmatprep.subr.bf16.mxu0 %v899_v0  ;;  %v120_v6 = vor.u32 %v119_v60, %v116_v59  ;;  %v129_v7 = vor.u32 %v128_v62, %v125_v61 }
  0x15   :  { %v81_v9 = vsel %vm1035_vm13, %v73_v2, %v80_v3  ;;  %v90_v10 = vsel %vm1045_vm14, %v72_v1, %v89_v58  ;;  %v94_v11 = vsel %vm1000_vm4, %v82_v4, %v93_v49  ;;  %vm96_vm4 = vmand %vm53_vm2, %vm87_vm11  ;;  %vm203_vm2 = vsmask.f32 7424 }
  0x16   :  { %91 = vst [vmem:[#allocation2] sm:$0xf] %v90_v10  ;;  %92 = vst [vmem:[#allocation2 + $0x4] sm:$0xf] %v81_v9  ;;  %v121_v13 = vrot.slane %v120_v6, 4  ;;  %v131_v15 = vrot.slane %v129_v7, 4  ;;  %v139_v16 = vsel %vm1064_vm6, %v120_v6, %v138_v14 }
  0x17   :  { %807 = vmatpush3.bf16.msra.mxu1 %v879_v23  ;;  %779 = vmatpush3.bf16.msra.mxu0 %v882_v30  ;;  %95 = vst [vmem:[#allocation2 + $0x8] sm:$0x1] %v94_v11  ;;  %140 = vst [vmem:[#allocation2 + $0x8] sm:$0xe] %v139_v16 }
  0x18   :  { %808 = vmatprep.subr.bf16.mxu1 %v899_v0  ;;  %780 = vmatprep.subr.bf16.mxu0 %v899_v0  ;;  %v130_v17 = vsel %vm1058_vm3, %v121_v13, %v129_v7  ;;  %v145_v18 = vsel %vm1051_vm1, %v131_v15, %v144_v12 }
  0x19   :  { %141 = vst [vmem:[#allocation2 + $0xc] sm:$0xf] %v130_v17  ;;  %146 = vst [vmem:[#allocation2 + $0x10] sm:$0x3] %v145_v18 }
  0x1b   :  { %809 = vmatpush3.bf16.msra.mxu1 %v881_v29  ;;  %781 = vmatpush3.bf16.msra.mxu0 %v884_v41 }
  0x1c   :  { %810 = vmatprep.subr.bf16.mxu1 %v899_v0  ;;  %782 = vmatprep.subr.bf16.mxu0 %v899_v0 }
  0x1d   :  { %v151_v21 = vld [vmem:[#allocation2] sm:$0xf]  ;;  %v1087_v22 = vld [vmem:[#allocation2 + $0x4] sm:$0xf] }
  0x1e   :  { %v97_v20 = vld [vmem:[#allocation2 + $0x8] sm:$0x1]  ;;  %v683_v24 = vcombine.low %v151_v21, %v1087_v22  ;;  %v444_v54 = vld [vmem:[#allocation2] sm:$0xe] }
  0x1f   :  { %811 = vmatpush3.bf16.msra.mxu1 %v883_v47  ;;  %783 = vmatpush3.bf16.msra.mxu0 %v888_v50  ;;  %v98_v23 = vsel %vm96_vm4, 0, %v97_v20  ;;  %v898_v50 = vld [vmem:[%s1177_s3 + $0x80] sm:$0xff]   ;;  %v719_v55 = vcombine.low %v444_v54, %v1087_v22 }
  0x20   :  { %852 = vmatprep.subr.bf16.mxu1 %v899_v0  ;;  %824 = vmatprep.subr.bf16.mxu0 %v899_v0  ;;  %99 = vst [vmem:[#allocation2 + $0x8] sm:$0x1] %v98_v23  ;;  %v207_v25 = vshll.u32 %v683_v24, 16  ;;  %v148_v26 = vld [vmem:[#allocation2 + $0x10] sm:$0x2]  ;;  %v205_v29 = vshrl.u32 %v683_v24, 16 }
  0x21   :  { %v149_v28 = vsel %vm147_vm7, 0, %v148_v26  ;;  %v893_v36 = vld [vmem:[#allocation2 + $0x10] ss:$0 sps:$4 sm:$0x33]   ;;  %v466_v56 = vrot.slane %v719_v55, 1 }
  0x22   :  { %813 = vmatmul.mubr.bf16.vlgmr.msra.gmra.mxu1 %v683_v24  ;;  %150 = vst [vmem:[#allocation2 + $0x10] sm:$0x2] %v149_v28  ;;  %v209_v30 = vrot.slane %v207_v25, 1  ;;  %v220_v39 = vshll.u32 %v893_v36, 16  ;;  %v224_v47 = vshrl.u32 %v893_v36, 16  ;;  %v469_v52 = vrot.slane %v893_v36, 1 }
  0x23   :  { %860 = vmatpush3.bf16.msra.mxu1 %v887_v19  ;;  %816 = vmatprep.mubr.msk.bf16.mxu1 %vm900_vm0, %v899_v0  ;;  %v895_v41 = vld [vmem:[#allocation2 + $0x10] ss:$0 sps:$4 sm:$0x11]  }
  0x24   :  { %853 = vmatprep.subr.bf16.mxu1 %v899_v0  ;;  %v210_v33 = vor.u32 %v209_v30, %v205_v29  ;;  %v222_v44 = vrot.slane %v220_v39, 1 }
  0x26   :  { %v226_v49 = vor.u32 %v224_v47, %v222_v44 }
  0x27   :  { %861 = vmatpush3.bf16.msra.mxu1 %v889_v27  ;;  %v1101_v32 = vld [vmem:[#allocation2 + $0x8] sm:$0xff]  }
  0x28   :  { %854 = vmatprep.subr.bf16.mxu1 %v899_v0  ;;  %v212_v34 = vshll.u32 %v1101_v32, 16  ;;  %v216_v38 = vshrl.u32 %v1101_v32, 16  ;;  %v467_v51 = vrot.slane %v1101_v32, 1 }
  0x2a   :  { %817 = vmatmul.mubr.bf16.gmra.mxu1 %v1101_v32  ;;  %v214_v37 = vrot.slane %v212_v34, 1  ;;  %v470_v53 = vsel %vm465_vm5, %v467_v51, %v469_v52  ;;  %v468_v57 = vsel %vm465_vm5, %v466_v56, %v467_v51 }
  0x2b   :  { %862 = vmatpush3.bf16.msra.mxu1 %v891_v31  ;;  %820 = vmatprep.mubr.msk.bf16.mxu1 %vm900_vm0, %v899_v0 }
  0x2c   :  { %855 = vmatprep.subr.bf16.mxu1 %v899_v0  ;;  %v215_v40 = vsel %vm203_vm2, %v210_v33, %v214_v37  ;;  %v218_v43 = vor.u32 %v216_v38, %v214_v37 }
  0x2d   :  { %785 = vmatmul.mubr.bf16.vlgmr.msra.gmra.mxu0 %v215_v40 }
  0x2e   :  { %825 = vmatpush3.bf16.msra.mxu0 %v887_v19  ;;  %788 = vmatprep.mubr.msk.bf16.mxu0 %vm900_vm0, %v899_v0  ;;  %v223_v46 = vsel %vm203_vm2, %v218_v43, %v222_v44 }
  0x2f   :  { %863 = vmatpush3.bf16.msra.mxu1 %v892_v35  ;;  %826 = vmatprep.subr.bf16.mxu0 %v899_v0 }
  0x30   :  { %856 = vmatprep.subr.bf16.mxu1 %v899_v0 }
  0x32   :  { %821 = vmatmul.mubr.bf16.gmra.mxu1 %v895_v41  ;;  %827 = vmatpush3.bf16.msra.mxu0 %v889_v27 }
  0x33   :  { %864 = vmatpush3.bf16.msra.mxu1 %v894_v42  ;;  %844 = vmatprep.mubr.msk.bf16.mxu1 %vm900_vm0, %v899_v0 }
  0x34   :  { %857 = vmatprep.subr.bf16.mxu1 %v899_v0  ;;  %828 = vmatprep.subr.bf16.mxu0 %v899_v0 }
  0x35   :  { %789 = vmatmul.mubr.bf16.gmra.mxu0 %v223_v46 }
  0x36   :  { %829 = vmatpush3.bf16.msra.mxu0 %v891_v31  ;;  %792 = vmatprep.mubr.msk.bf16.mxu0 %vm900_vm0, %v899_v0 }
  0x37   :  { %865 = vmatpush3.bf16.msra.mxu1 %v896_v45  ;;  %830 = vmatprep.subr.bf16.mxu0 %v899_v0 }
  0x38   :  { %858 = vmatprep.subr.bf16.mxu1 %v899_v0 }
  0x3a   :  { %831 = vmatpush3.bf16.msra.mxu0 %v892_v35 }
  0x3b   :  { %866 = vmatpush3.bf16.msra.mxu1 %v897_v48  ;;  %832 = vmatprep.subr.bf16.mxu0 %v899_v0 }
  0x3c   :  { %859 = vmatprep.subr.bf16.mxu1 %v899_v0 }
  0x3d   :  { %793 = vmatmul.mubr.bf16.gmra.mxu0 %v226_v49 }
  0x3e   :  { %833 = vmatpush3.bf16.msra.mxu0 %v894_v42  ;;  %840 = vmatprep.mubr.msk.bf16.mxu0 %vm900_vm0, %v899_v0 }
  0x3f   :  { %867 = vmatpush3.bf16.msra.mxu1 %v898_v50  ;;  %834 = vmatprep.subr.bf16.mxu0 %v899_v0 }
  0x42   :  { %845 = vmatmul.mubr.bf16.vlgmr.msra.gmra.mxu1 %v470_v53  ;;  %835 = vmatpush3.bf16.msra.mxu0 %v896_v45 }
  0x43   :  { %848 = vmatprep.mubr.msk.bf16.mxu1 %vm900_vm0, %v899_v0  ;;  %836 = vmatprep.subr.bf16.mxu0 %v899_v0  ;;  %vm610_vm0 = vcmask 1045504  }
  0x46   :  { %837 = vmatpush3.bf16.msra.mxu0 %v897_v48 }
  0x47   :  { %838 = vmatprep.subr.bf16.mxu0 %v899_v0 }
  0x4a   :  { %849 = vmatmul.mubr.bf16.gmra.mxu1 %v469_v52  ;;  %839 = vmatpush3.bf16.msra.mxu0 %v898_v50 }
  0x4d   :  { %841 = vmatmul.mubr.bf16.vlgmr.msra.gmra.mxu0 %v468_v57 }
  0xe2   :  { %v422_v58 = vpop.f32.mrf.mxu1 }
  0xe4   :  { %v814_v59 = vpop.f32.mrf.mxu1 }
  0xe6   :  { %v425_v60 = vpop.f32.mrf.mxu1 }
  0xe8   :  { %v815_v61 = vpop.f32.mrf.mxu1 }
  0xea   :  { %v430_v62 = vpop.f32.mrf.mxu1 }
  0xec   :  { %v818_v63 = vpop.f32.mrf.mxu1 }
  0xed   :  { %v312_v2 = vpop.f32.mrf.mxu0 }
  0xee   :  { %v433_v1 = vpop.f32.mrf.mxu1  ;;  %v423_v37 = vadd.f32 %v422_v58, %v312_v2 }
  0xef   :  { %v786_v4 = vpop.f32.mrf.mxu0 }
  0xf0   :  { %v819_v3 = vpop.f32.mrf.mxu1 }
  0xf1   :  { %v315_v6 = vpop.f32.mrf.mxu0 }
  0xf2   :  { %v438_v5 = vpop.f32.mrf.mxu1  ;;  %v426_v50 = vadd.f32 %v425_v60, %v315_v6 }
  0xf3   :  { %v787_v8 = vpop.f32.mrf.mxu0 }
  0xf4   :  { %v822_v7 = vpop.f32.mrf.mxu1 }
  0xf5   :  { %v320_v9 = vpop.f32.mrf.mxu0 }
  0xf6   :  { %v441_v0 = vpop.f32.mrf.mxu1  ;;  %v431_v15 = vadd.f32 %v430_v62, %v320_v9 }
  0xf7   :  { %v790_v11 = vpop.f32.mrf.mxu0 }
  0xf8   :  { %v823_v10 = vpop.f32.mrf.mxu1 }
  0xf9   :  { %v323_v12 = vpop.f32.mrf.mxu0 }
  0xfa   :  { %v434_v21 = vadd.f32 %v433_v1, %v323_v12 }
  0xfb   :  { %v791_v13 = vpop.f32.mrf.mxu0 }
  0xfd   :  { %v328_v14 = vpop.f32.mrf.mxu0 }
  0xfe   :  { %v439_v26 = vadd.f32 %v438_v5, %v328_v14 }
  0xff   :  { %v794_v16 = vpop.f32.mrf.mxu0 }
 0x101   :  { %v331_v18 = vpop.f32.mrf.mxu0 }
 0x102   :  { %v564_v17 = vpop.f32.mrf.mxu1 }
 0x103   :  { %v580_v19 = vadd.f32 %v564_v17, %v431_v15  ;;  %v795_v22 = vpop.f32.mrf.mxu0 }
 0x104   :  { %v846_v20 = vpop.f32.mrf.mxu1 }
 0x105   :  { %728 = vst [vmem:[%s1181_s4 + $0xe] sm:$0xfc] %v580_v19  ;;  %v626_v29 = vmul.f32 %v580_v19, %v580_v19  ;;  %v611_v33 = vrot.slane %v580_v19, 2 }
 0x106   :  { %v567_v23 = vpop.f32.mrf.mxu1 }
 0x107   :  { %v581_v24 = vadd.f32 %v567_v23, %v434_v21  ;;  %v632_v39 = vrot.slane %v626_v29, 2 }
 0x108   :  { %v847_v25 = vpop.f32.mrf.mxu1 }
 0x109   :  { %729 = vst [vmem:[%s1181_s4 + $0x16] sm:$0xff] %v581_v24  ;;  %v627_v27 = vmul.f32 %v581_v24, %v581_v24  ;;  %v612_v30 = vrot.slane %v581_v24, 2 }
 0x10a   :  { %v572_v28 = vpop.f32.mrf.mxu1 }
 0x10b   :  { %v582_v31 = vadd.f32 %v572_v28, %v439_v26  ;;  %v633_v34 = vrot.slane %v627_v27, 2  ;;  %v613_v40 = vsel %vm610_vm0, %v611_v33, %v612_v30 }
 0x10c   :  { %v850_v32 = vpop.f32.mrf.mxu1 }
 0x10d   :  { %730 = vst [vmem:[%s1181_s4 + $0x1e] sm:$0x3] %v582_v31  ;;  %v614_v35 = vrot.slane %v582_v31, 2  ;;  %v628_v36 = vmul.f32 %v582_v31, %v582_v31  ;;  %v556_v41 = vpop.f32.mrf.mxu0  ;;  %v634_v47 = vsel %vm610_vm0, %v632_v39, %v633_v34 }
 0x10e   :  { %v575_v38 = vpop.f32.mrf.mxu1  ;;  %v578_v44 = vadd.f32 %v556_v41, %v423_v37 }
 0x10f   :  { %v615_v42 = vsel %vm610_vm0, %v612_v30, %v614_v35  ;;  %v635_v43 = vrot.slane %v628_v36, 2  ;;  %v842_v48 = vpop.f32.mrf.mxu0 }
 0x110   :  { %v618_v45 = vadd.f32 %v615_v42, %v613_v40  ;;  %v851_v46 = vpop.f32.mrf.mxu1  ;;  %583 = vst [vmem:[%s1181_s4] sm:$0xff] %v578_v44  ;;  %v593_v57 = vmul.f32 %v578_v44, %v578_v44 }
 0x111   :  { %v636_v49 = vsel %vm610_vm0, %v633_v34, %v635_v43  ;;  %v559_v53 = vpop.f32.mrf.mxu0 }
 0x112   :  { %v619_v51 = vrot.slane %v618_v45, 4  ;;  %v639_v52 = vadd.f32 %v636_v49, %v634_v47  ;;  %v579_v56 = vadd.f32 %v559_v53, %v426_v50 }
 0x113   :  { %v843_v58 = vpop.f32.mrf.mxu0 }
 0x114   :  { %v620_v54 = vadd.f32 %v619_v51, %v618_v45  ;;  %v640_v55 = vrot.slane %v639_v52, 4  ;;  %584 = vst [vmem:[%s1181_s4 + $0x8] sm:$0xff] %v579_v56  ;;  %v585_v62 = vadd.f32 %v579_v56, %v578_v44  ;;  %v594_v60 = vmul.f32 %v579_v56, %v579_v56 }
 0x116   :  { %v621_v59 = vrot.slane %v620_v54, 2  ;;  %v641_v61 = vadd.f32 %v640_v55, %v639_v52  ;;  %v586_v2 = vrot.slane %v585_v62, 4  ;;  %v595_v3 = vadd.f32 %v594_v60, %v593_v57 }
 0x118   :  { %v622_v63 = vadd.f32 %v621_v59, %v620_v54  ;;  %v642_v1 = vrot.slane %v641_v61, 2  ;;  %v587_v5 = vadd.f32 %v586_v2, %v585_v62  ;;  %v596_v6 = vrot.slane %v595_v3, 4 }
 0x11a   :  { %v643_v4 = vadd.f32 %v642_v1, %v641_v61  ;;  %v623_v7 = vrot.slane %v622_v63, 1  ;;  %v588_v8 = vrot.slane %v587_v5, 2  ;;  %v597_v0 = vadd.f32 %v596_v6, %v595_v3 }
 0x11c   :  { %v644_v9 = vrot.slane %v643_v4, 1  ;;  %v589_v10 = vadd.f32 %v588_v8, %v587_v5  ;;  %v598_v11 = vrot.slane %v597_v0, 2  ;;  %v624_v14 = vadd.f32 %v623_v7, %v622_v63 }
 0x11e   :  { %v590_v12 = vrot.slane %v589_v10, 1  ;;  %v599_v13 = vadd.f32 %v598_v11, %v597_v0  ;;  %v645_v17 = vadd.f32 %v644_v9, %v643_v4 }
 0x120   :  { %v591_v15 = vadd.f32 %v590_v12, %v589_v10  ;;  %v600_v16 = vrot.slane %v599_v13, 1 }
 0x122   :  { %v601_v18 = vadd.f32 %v600_v16, %v599_v13  ;;  %v625_v19 = vadd.f32 %v624_v14, %v591_v15 }
 0x124   :  { %v646_v20 = vadd.f32 %v645_v17, %v601_v18  ;;  %647 = vst [vmem:[%s1182_s5] sm:$0x1] %v625_v19 }
 0x126   :  { %648 = vst [vmem:[%s1183_s6] sm:$0x1] %v646_v20 }

// kernel: sphere_decoder.4
= control target key start
LH: loop header
LB: loop body
LE: loop exit
PB: predicated region body
PF: predicated region fallthrough
CT: control target
= control target key end

     0   :  { %v895_v0 = vmov 0.0   ;;  %vm896_vm0 = vmmov 0   ;;  %vm50_vm1 = vsmask.f32 256  ;;  %vm49_vm2 = vcmask 1040384   ;;  %s1167_s3 = inlined_call_operand.vmem [shape: bf16[3,128,128], index: 3, kind: input, shape index: {}]   ;;  %s1168_s0 = inlined_call_operand.vmem [shape: f32[2,16,128], index: 0, kind: input, shape index: {}]   ;;  %s1169_s1 = inlined_call_operand.vmem [shape: f32[1,128], index: 1, kind: input, shape index: {}]   ;;  %s1170_s2 = inlined_call_operand.vmem [shape: f32[1,128], index: 2, kind: input, shape index: {}]   ;;  %s1171_s4 = inlined_call_operand.vmem [shape: f32[2,16,128], index: 4, kind: output, shape index: {0}]   ;;  %s1172_s5 = inlined_call_operand.vmem [shape: f32[1,1,128], index: 5, kind: output, shape index: {1}]   ;;  %s1173_s6 = inlined_call_operand.vmem [shape: f32[1,1,128], index: 6, kind: output, shape index: {2}]  }
   0x1   :  { %792 = vmatprep.subr.bf16.mxu1 %v895_v0  ;;  %v866_v1 = vld [vmem:[%s1167_s3 + $0x38] sm:$0xff]   ;;  %764 = vmatprep.subr.bf16.mxu0 %v895_v0  ;;  %v868_v3 = vld [vmem:[%s1167_s3 + $0x30] sm:$0xff]   ;;  %v870_v5 = vld [vmem:[%s1167_s3 + $0x28] sm:$0xff]   ;;  %vm82_vm3 = vcmask 1043456   ;;  %vm96_vm4 = vcmask 1041409   ;;  %vm131_vm5 = vcmask 1043457  }
   0x2   :  { %v867_v2 = vld [vmem:[%s1167_s3 + $0x78] sm:$0xff]   ;;  %808 = vmatprep.mubr.msk.bf16.mxu1 %vm896_vm0, %v895_v0  ;;  %780 = vmatprep.mubr.msk.bf16.mxu0 %vm896_vm0, %v895_v0  ;;  %v869_v4 = vld [vmem:[%s1167_s3 + $0x70] sm:$0xff]   ;;  %v871_v6 = vld [vmem:[%s1167_s3 + $0x68] sm:$0xff]   ;;  %vm138_vm7 = vcmask 1041408   ;;  %vm60_vm8 = vsmask.f32 4368 }
   0x3   :  { %793 = vmatpush3.bf16.msra.mxu1 %v866_v1  ;;  %765 = vmatpush3.bf16.msra.mxu0 %v867_v2  ;;  %v872_v7 = vld [vmem:[%s1167_s3 + $0x20] sm:$0xff]   ;;  %v874_v9 = vld [vmem:[%s1167_s3 + $0x18] sm:$0xff]   ;;  %v22_v12 = vld [vmem:[%s1168_s0 + $0x8] sm:$0xff]  ;;  %vm83_vm9 = vsmask.f32 7938 }
   0x4   :  { %794 = vmatprep.subr.bf16.mxu1 %v895_v0  ;;  %766 = vmatprep.subr.bf16.mxu0 %v895_v0  ;;  %v873_v8 = vld [vmem:[%s1167_s3 + $0x60] sm:$0xff]   ;;  %v875_v10 = vld [vmem:[%s1167_s3 + $0x58] sm:$0xff]   ;;  %v23_v13 = vld [vmem:[%s1168_s0 + $0x10] sm:$0xff]  ;;  %vm97_vm10 = vsmask.f32 1280 }
   0x5   :  { %v21_v11 = vld [vmem:[%s1168_s0] sm:$0xff]  ;;  %v24_v14 = vld [vmem:[%s1168_s0 + $0x18] sm:$0xff]  ;;  %v876_v17 = vld [vmem:[%s1167_s3 + $0x10] sm:$0xff]   ;;  %vm107_vm11 = vsmask.f32 5392 }
   0x6   :  { %v657_v15 = vld [vmem:[%s1169_s1] ss:$0 sm:$0xff]  ;;  %vm999_vm6 = vmand %vm49_vm2, %vm50_vm1  ;;  %v877_v24 = vld [vmem:[%s1167_s3 + $0x50] sm:$0xff]   ;;  %vm132_vm13 = vsmask.f32 7942 }
   0x7   :  { %795 = vmatpush3.bf16.msra.mxu1 %v868_v3  ;;  %767 = vmatpush3.bf16.msra.mxu0 %v869_v4  ;;  %v658_v16 = vld [vmem:[%s1170_s2] ss:$0 sm:$0xff]  ;;  %v32_v18 = vmul.f32 %v657_v15, %v21_v11  ;;  %v33_v19 = vmul.f32 %v657_v15, %v22_v12  ;;  %v34_v20 = vmul.f32 %v657_v15, %v23_v13  ;;  %v878_v26 = vld [vmem:[%s1167_s3 + $0x8] sm:$0xff]   ;;  %vm98_vm12 = vmand %vm96_vm4, %vm97_vm10 }
   0x8   :  { %796 = vmatprep.subr.bf16.mxu1 %v895_v0  ;;  %768 = vmatprep.subr.bf16.mxu0 %v895_v0  ;;  %v35_v21 = vmul.f32 %v657_v15, %v24_v14  ;;  %v52_v23 = vld [vmem:[#allocation2] sm:$0x1]  ;;  %v99_v31 = vld [vmem:[#allocation2 + $0x8] sm:$0x2]  ;;  %vm1028_vm14 = vmor %vm50_vm1, %vm60_vm8 }
   0x9   :  { %v53_v25 = vsel %vm999_vm6, 0, %v52_v23  ;;  %v43_v27 = vadd.f32 %v658_v16, %v32_v18  ;;  %v44_v28 = vadd.f32 %v658_v16, %v33_v19  ;;  %v45_v29 = vadd.f32 %v658_v16, %v34_v20  ;;  %v879_v36 = vld [vmem:[%s1167_s3 + $0x48] sm:$0xff]   ;;  %v880_v42 = vld [vmem:[%s1167_s3] sm:$0xff]   ;;  %vm1034_vm15 = vmand %vm82_vm3, %vm83_vm9 }
   0xa   :  { %v46_v30 = vadd.f32 %v658_v16, %v35_v21  ;;  %54 = vst [vmem:[#allocation2] sm:$0x1] %v53_v25  ;;  %v100_v37 = vsel %vm98_vm12, 0, %v99_v31  ;;  %v881_v43 = vld [vmem:[%s1167_s3 + $0x40] sm:$0xff]   ;;  %v89_v52 = vld [vmem:[#allocation2 + $0x8] sm:$0x1]  ;;  %vm1041_vm1 = vmor %vm97_vm10, %vm107_vm11 }
   0xb   :  { %797 = vmatpush3.bf16.msra.mxu1 %v870_v5  ;;  %769 = vmatpush3.bf16.msra.mxu0 %v871_v6  ;;  %v727_v32 = vpack.c.bf16 %v43_v27, %v43_v27  ;;  %v728_v33 = vpack.c.bf16 %v44_v28, %v44_v28  ;;  %v729_v34 = vpack.c.bf16 %v45_v29, %v45_v29  ;;  %vm1048_vm3 = vmand %vm131_vm5, %vm132_vm13  ;;  %v884_v14 = vld [vmem:[%s1167_s3 + $0xb8] sm:$0xff]   ;;  %v886_v22 = vld [vmem:[%s1167_s3 + $0xb0] sm:$0xff]  }
   0xc   :  { %798 = vmatprep.subr.bf16.mxu1 %v895_v0  ;;  %770 = vmatprep.subr.bf16.mxu0 %v895_v0  ;;  %v730_v35 = vpack.c.bf16 %v46_v30, %v46_v30  ;;  %101 = vst [vmem:[#allocation2 + $0x8] sm:$0x2] %v100_v37  ;;  %vm1054_vm8 = vmand %vm138_vm7, %vm97_vm10  ;;  %v889_v31 = vld [vmem:[%s1167_s3 + $0xa0] sm:$0xff]   ;;  %v890_v37 = vld [vmem:[%s1167_s3 + $0x98] sm:$0xff]  }
   0xd   :  { %v63_v38 = vshrl.u32 %v727_v32, 16  ;;  %v66_v39 = vshll.u32 %v727_v32, 16  ;;  %v71_v40 = vshrl.u32 %v728_v33, 16  ;;  %v74_v41 = vshll.u32 %v728_v33, 16  ;;  %vm92_vm5 = vmand %vm49_vm2, %vm83_vm9 }
   0xe   :  { %v110_v45 = vshrl.u32 %v729_v34, 16  ;;  %v113_v46 = vshll.u32 %v729_v34, 16  ;;  %v119_v47 = vshrl.u32 %v730_v35, 16  ;;  %v122_v48 = vshll.u32 %v730_v35, 16 }
   0xf   :  { %799 = vmatpush3.bf16.msra.mxu1 %v872_v7  ;;  %771 = vmatpush3.bf16.msra.mxu0 %v873_v8  ;;  %v65_v49 = vrot.slane %v63_v38, 7  ;;  %v73_v50 = vrot.slane %v71_v40, 7  ;;  %v140_v7 = vld [vmem:[#allocation2 + $0x10] sm:$0x3]  ;;  %vm199_vm2 = vsmask.f32 7424 }
  0x10   :  { %800 = vmatprep.subr.bf16.mxu1 %v895_v0  ;;  %772 = vmatprep.subr.bf16.mxu0 %v895_v0  ;;  %v112_v55 = vrot.slane %v110_v45, 6  ;;  %v115_v56 = vrot.slane %v113_v46, 7  ;;  %v121_v57 = vrot.slane %v119_v47, 6  ;;  %v124_v58 = vrot.slane %v122_v48, 7  ;;  %v892_v40 = vld [vmem:[%s1167_s3 + $0x90] sm:$0xff]   ;;  %v894_v45 = vld [vmem:[%s1167_s3 + $0x80] sm:$0xff]  }
  0x11   :  { %v85_v53 = vld [vmem:[#allocation2] sm:$0xf]  ;;  %v68_v59 = vor.u32 %v66_v39, %v65_v49  ;;  %v69_v60 = vrot.slane %v65_v49, 4  ;;  %v76_v61 = vor.u32 %v74_v41, %v73_v50  ;;  %v78_v62 = vrot.slane %v73_v50, 4 }
  0x12   :  { %v116_v1 = vor.u32 %v115_v56, %v112_v55  ;;  %v125_v2 = vor.u32 %v124_v58, %v121_v57 }
  0x13   :  { %801 = vmatpush3.bf16.msra.mxu1 %v874_v9  ;;  %773 = vmatpush3.bf16.msra.mxu0 %v875_v10  ;;  %v77_v4 = vsel %vm1028_vm14, %v69_v60, %v76_v61  ;;  %v86_v5 = vsel %vm1034_vm15, %v68_v59, %v85_v53  ;;  %v90_v6 = vsel %vm999_vm6, %v78_v62, %v89_v52  ;;  %v134_v9 = vld [vmem:[#allocation2 + $0x8] sm:$0xe]  ;;  %vm143_vm6 = vmand %vm96_vm4, %vm132_vm13  ;;  %vm461_vm4 = vcmask 1046528  }
  0x14   :  { %802 = vmatprep.subr.bf16.mxu1 %v895_v0  ;;  %774 = vmatprep.subr.bf16.mxu0 %v895_v0  ;;  %87 = vst [vmem:[#allocation2] sm:$0xf] %v86_v5  ;;  %88 = vst [vmem:[#allocation2 + $0x4] sm:$0xf] %v77_v4  ;;  %v117_v8 = vrot.slane %v116_v1, 4  ;;  %v127_v10 = vrot.slane %v125_v2, 4  ;;  %v135_v11 = vsel %vm1048_vm3, %v116_v1, %v134_v9 }
  0x15   :  { %91 = vst [vmem:[#allocation2 + $0x8] sm:$0x1] %v90_v6  ;;  %136 = vst [vmem:[#allocation2 + $0x8] sm:$0xe] %v135_v11 }
  0x16   :  { %v126_v12 = vsel %vm1041_vm1, %v117_v8, %v125_v2  ;;  %v141_v13 = vsel %vm1054_vm8, %v127_v10, %v140_v7 }
  0x17   :  { %803 = vmatpush3.bf16.msra.mxu1 %v876_v17  ;;  %775 = vmatpush3.bf16.msra.mxu0 %v877_v24  ;;  %137 = vst [vmem:[#allocation2 + $0xc] sm:$0xf] %v126_v12  ;;  %142 = vst [vmem:[#allocation2 + $0x10] sm:$0x3] %v141_v13 }
  0x18   :  { %804 = vmatprep.subr.bf16.mxu1 %v895_v0  ;;  %776 = vmatprep.subr.bf16.mxu0 %v895_v0 }
  0x1b   :  { %805 = vmatpush3.bf16.msra.mxu1 %v878_v26  ;;  %777 = vmatpush3.bf16.msra.mxu0 %v879_v36  ;;  %v147_v16 = vld [vmem:[#allocation2] sm:$0xf]  ;;  %v1077_v17 = vld [vmem:[#allocation2 + $0x4] sm:$0xf]  ;;  %v887_v26 = vld [vmem:[%s1167_s3 + $0xa8] sm:$0xff]  }
  0x1c   :  { %806 = vmatprep.subr.bf16.mxu1 %v895_v0  ;;  %778 = vmatprep.subr.bf16.mxu0 %v895_v0  ;;  %v93_v15 = vld [vmem:[#allocation2 + $0x8] sm:$0x1]  ;;  %v679_v19 = vcombine.low %v147_v16, %v1077_v17  ;;  %v440_v49 = vld [vmem:[#allocation2] sm:$0xe] }
  0x1d   :  { %v94_v18 = vsel %vm92_vm5, 0, %v93_v15  ;;  %v715_v50 = vcombine.low %v440_v49, %v1077_v17 }
  0x1e   :  { %95 = vst [vmem:[#allocation2 + $0x8] sm:$0x1] %v94_v18  ;;  %v203_v20 = vshll.u32 %v679_v19, 16  ;;  %v144_v21 = vld [vmem:[#allocation2 + $0x10] sm:$0x2]  ;;  %v201_v24 = vshrl.u32 %v679_v19, 16 }
  0x1f   :  { %807 = vmatpush3.bf16.msra.mxu1 %v880_v42  ;;  %779 = vmatpush3.bf16.msra.mxu0 %v881_v43  ;;  %v145_v23 = vsel %vm143_vm6, 0, %v144_v21  ;;  %v888_v30 = vld [vmem:[#allocation2 + $0x10] ss:$0 sps:$4 sm:$0x33]   ;;  %v893_v43 = vld [vmem:[%s1167_s3 + $0x88] sm:$0xff]   ;;  %v462_v51 = vrot.slane %v715_v50, 1 }
  0x20   :  { %848 = vmatprep.subr.bf16.mxu1 %v895_v0  ;;  %820 = vmatprep.subr.bf16.mxu0 %v895_v0  ;;  %146 = vst [vmem:[#allocation2 + $0x10] sm:$0x2] %v145_v23  ;;  %v205_v25 = vrot.slane %v203_v20, 1  ;;  %v216_v34 = vshll.u32 %v888_v30, 16  ;;  %v220_v42 = vshrl.u32 %v888_v30, 16  ;;  %v465_v47 = vrot.slane %v888_v30, 1 }
  0x21   :  { %v891_v36 = vld [vmem:[#allocation2 + $0x10] ss:$0 sps:$4 sm:$0x11]  }
  0x22   :  { %809 = vmatmul.mubr.bf16.vlgmr.msra.gmra.mxu1 %v679_v19  ;;  %v206_v28 = vor.u32 %v205_v25, %v201_v24  ;;  %v218_v39 = vrot.slane %v216_v34, 1 }
  0x23   :  { %856 = vmatpush3.bf16.msra.mxu1 %v884_v14  ;;  %812 = vmatprep.mubr.msk.bf16.mxu1 %vm896_vm0, %v895_v0 }
  0x24   :  { %849 = vmatprep.subr.bf16.mxu1 %v895_v0  ;;  %v222_v44 = vor.u32 %v220_v42, %v218_v39 }
  0x25   :  { %v1091_v27 = vld [vmem:[#allocation2 + $0x8] sm:$0xff]  }
  0x26   :  { %v208_v29 = vshll.u32 %v1091_v27, 16  ;;  %v212_v33 = vshrl.u32 %v1091_v27, 16  ;;  %v463_v46 = vrot.slane %v1091_v27, 1 }
  0x27   :  { %857 = vmatpush3.bf16.msra.mxu1 %v886_v22 }
  0x28   :  { %850 = vmatprep.subr.bf16.mxu1 %v895_v0  ;;  %v210_v32 = vrot.slane %v208_v29, 1  ;;  %v466_v48 = vsel %vm461_vm4, %v463_v46, %v465_v47  ;;  %v464_v52 = vsel %vm461_vm4, %v462_v51, %v463_v46 }
  0x2a   :  { %813 = vmatmul.mubr.bf16.gmra.mxu1 %v1091_v27  ;;  %v211_v35 = vsel %vm199_vm2, %v206_v28, %v210_v32  ;;  %v214_v38 = vor.u32 %v212_v33, %v210_v32 }
  0x2b   :  { %858 = vmatpush3.bf16.msra.mxu1 %v887_v26  ;;  %816 = vmatprep.mubr.msk.bf16.mxu1 %vm896_vm0, %v895_v0 }
  0x2c   :  { %851 = vmatprep.subr.bf16.mxu1 %v895_v0  ;;  %781 = vmatmul.mubr.bf16.vlgmr.msra.gmra.mxu0 %v211_v35  ;;  %v219_v41 = vsel %vm199_vm2, %v214_v38, %v218_v39 }
  0x2d   :  { %821 = vmatpush3.bf16.msra.mxu0 %v884_v14  ;;  %784 = vmatprep.mubr.msk.bf16.mxu0 %vm896_vm0, %v895_v0 }
  0x2e   :  { %822 = vmatprep.subr.bf16.mxu0 %v895_v0 }
  0x2f   :  { %859 = vmatpush3.bf16.msra.mxu1 %v889_v31 }
  0x30   :  { %852 = vmatprep.subr.bf16.mxu1 %v895_v0 }
  0x31   :  { %823 = vmatpush3.bf16.msra.mxu0 %v886_v22 }
  0x32   :  { %817 = vmatmul.mubr.bf16.gmra.mxu1 %v891_v36  ;;  %824 = vmatprep.subr.bf16.mxu0 %v895_v0 }
  0x33   :  { %860 = vmatpush3.bf16.msra.mxu1 %v890_v37  ;;  %840 = vmatprep.mubr.msk.bf16.mxu1 %vm896_vm0, %v895_v0 }
  0x34   :  { %853 = vmatprep.subr.bf16.mxu1 %v895_v0  ;;  %785 = vmatmul.mubr.bf16.gmra.mxu0 %v219_v41 }
  0x35   :  { %825 = vmatpush3.bf16.msra.mxu0 %v887_v26  ;;  %788 = vmatprep.mubr.msk.bf16.mxu0 %vm896_vm0, %v895_v0 }
  0x36   :  { %826 = vmatprep.subr.bf16.mxu0 %v895_v0 }
  0x37   :  { %861 = vmatpush3.bf16.msra.mxu1 %v892_v40 }
  0x38   :  { %854 = vmatprep.subr.bf16.mxu1 %v895_v0 }
  0x39   :  { %827 = vmatpush3.bf16.msra.mxu0 %v889_v31 }
  0x3a   :  { %828 = vmatprep.subr.bf16.mxu0 %v895_v0 }
  0x3b   :  { %862 = vmatpush3.bf16.msra.mxu1 %v893_v43 }
  0x3c   :  { %855 = vmatprep.subr.bf16.mxu1 %v895_v0  ;;  %789 = vmatmul.mubr.bf16.gmra.mxu0 %v222_v44 }
  0x3d   :  { %829 = vmatpush3.bf16.msra.mxu0 %v890_v37  ;;  %836 = vmatprep.mubr.msk.bf16.mxu0 %vm896_vm0, %v895_v0 }
  0x3e   :  { %830 = vmatprep.subr.bf16.mxu0 %v895_v0 }
  0x3f   :  { %863 = vmatpush3.bf16.msra.mxu1 %v894_v45 }
  0x41   :  { %831 = vmatpush3.bf16.msra.mxu0 %v892_v40 }
  0x42   :  { %841 = vmatmul.mubr.bf16.vlgmr.msra.gmra.mxu1 %v466_v48  ;;  %832 = vmatprep.subr.bf16.mxu0 %v895_v0 }
  0x43   :  { %844 = vmatprep.mubr.msk.bf16.mxu1 %vm896_vm0, %v895_v0  ;;  %vm606_vm0 = vcmask 1045504  }
  0x45   :  { %833 = vmatpush3.bf16.msra.mxu0 %v893_v43 }
  0x46   :  { %834 = vmatprep.subr.bf16.mxu0 %v895_v0 }
  0x49   :  { %835 = vmatpush3.bf16.msra.mxu0 %v894_v45 }
  0x4a   :  { %845 = vmatmul.mubr.bf16.gmra.mxu1 %v465_v47 }
  0x4c   :  { %837 = vmatmul.mubr.bf16.vlgmr.msra.gmra.mxu0 %v464_v52 }
  0xe2   :  { %v418_v53 = vpop.f32.mrf.mxu1 }
  0xe4   :  { %v810_v54 = vpop.f32.mrf.mxu1 }
  0xe6   :  { %v421_v55 = vpop.f32.mrf.mxu1 }
  0xe8   :  { %v811_v56 = vpop.f32.mrf.mxu1 }
  0xea   :  { %v426_v57 = vpop.f32.mrf.mxu1 }
  0xec   :  { %v814_v58 = vpop.f32.mrf.mxu1  ;;  %v308_v60 = vpop.f32.mrf.mxu0 }
  0xed   :  { %v419_v32 = vadd.f32 %v418_v53, %v308_v60 }
  0xee   :  { %v429_v59 = vpop.f32.mrf.mxu1  ;;  %v782_v62 = vpop.f32.mrf.mxu0 }
  0xf0   :  { %v815_v61 = vpop.f32.mrf.mxu1  ;;  %v311_v1 = vpop.f32.mrf.mxu0 }
  0xf1   :  { %v422_v45 = vadd.f32 %v421_v55, %v311_v1 }
  0xf2   :  { %v434_v63 = vpop.f32.mrf.mxu1  ;;  %v783_v3 = vpop.f32.mrf.mxu0 }
  0xf4   :  { %v818_v2 = vpop.f32.mrf.mxu1  ;;  %v316_v4 = vpop.f32.mrf.mxu0 }
  0xf5   :  { %v427_v10 = vadd.f32 %v426_v57, %v316_v4 }
  0xf6   :  { %v437_v0 = vpop.f32.mrf.mxu1  ;;  %v786_v6 = vpop.f32.mrf.mxu0 }
  0xf8   :  { %v819_v5 = vpop.f32.mrf.mxu1  ;;  %v319_v7 = vpop.f32.mrf.mxu0 }
  0xf9   :  { %v430_v16 = vadd.f32 %v429_v59, %v319_v7 }
  0xfa   :  { %v787_v8 = vpop.f32.mrf.mxu0 }
  0xfc   :  { %v324_v9 = vpop.f32.mrf.mxu0 }
  0xfd   :  { %v435_v21 = vadd.f32 %v434_v63, %v324_v9 }
  0xfe   :  { %v790_v11 = vpop.f32.mrf.mxu0 }
 0x100   :  { %v327_v13 = vpop.f32.mrf.mxu0 }
 0x102   :  { %v560_v12 = vpop.f32.mrf.mxu1  ;;  %v791_v17 = vpop.f32.mrf.mxu0 }
 0x103   :  { %v576_v14 = vadd.f32 %v560_v12, %v427_v10 }
 0x104   :  { %v842_v15 = vpop.f32.mrf.mxu1 }
 0x105   :  { %724 = vst [vmem:[%s1171_s4 + $0xe] sm:$0xfc] %v576_v14  ;;  %v622_v24 = vmul.f32 %v576_v14, %v576_v14  ;;  %v607_v28 = vrot.slane %v576_v14, 2 }
 0x106   :  { %v563_v18 = vpop.f32.mrf.mxu1 }
 0x107   :  { %v577_v19 = vadd.f32 %v563_v18, %v430_v16  ;;  %v628_v34 = vrot.slane %v622_v24, 2 }
 0x108   :  { %v843_v20 = vpop.f32.mrf.mxu1 }
 0x109   :  { %725 = vst [vmem:[%s1171_s4 + $0x16] sm:$0xff] %v577_v19  ;;  %v623_v22 = vmul.f32 %v577_v19, %v577_v19  ;;  %v608_v25 = vrot.slane %v577_v19, 2 }
 0x10a   :  { %v568_v23 = vpop.f32.mrf.mxu1 }
 0x10b   :  { %v578_v26 = vadd.f32 %v568_v23, %v435_v21  ;;  %v629_v29 = vrot.slane %v623_v22, 2  ;;  %v609_v36 = vsel %vm606_vm0, %v607_v28, %v608_v25 }
 0x10c   :  { %v846_v27 = vpop.f32.mrf.mxu1  ;;  %v552_v35 = vpop.f32.mrf.mxu0 }
 0x10d   :  { %726 = vst [vmem:[%s1171_s4 + $0x1e] sm:$0x3] %v578_v26  ;;  %v610_v30 = vrot.slane %v578_v26, 2  ;;  %v624_v31 = vmul.f32 %v578_v26, %v578_v26  ;;  %v574_v39 = vadd.f32 %v552_v35, %v419_v32  ;;  %v630_v42 = vsel %vm606_vm0, %v628_v34, %v629_v29 }
 0x10e   :  { %v571_v33 = vpop.f32.mrf.mxu1  ;;  %v838_v43 = vpop.f32.mrf.mxu0 }
 0x10f   :  { %v611_v37 = vsel %vm606_vm0, %v608_v25, %v610_v30  ;;  %v631_v38 = vrot.slane %v624_v31, 2  ;;  %579 = vst [vmem:[%s1171_s4] sm:$0xff] %v574_v39  ;;  %v589_v52 = vmul.f32 %v574_v39, %v574_v39 }
 0x110   :  { %v614_v40 = vadd.f32 %v611_v37, %v609_v36  ;;  %v847_v41 = vpop.f32.mrf.mxu1  ;;  %v555_v48 = vpop.f32.mrf.mxu0 }
 0x111   :  { %v632_v44 = vsel %vm606_vm0, %v629_v29, %v631_v38  ;;  %v575_v49 = vadd.f32 %v555_v48, %v422_v45 }
 0x112   :  { %v615_v46 = vrot.slane %v614_v40, 4  ;;  %v635_v47 = vadd.f32 %v632_v44, %v630_v42  ;;  %v839_v53 = vpop.f32.mrf.mxu0 }
 0x113   :  { %580 = vst [vmem:[%s1171_s4 + $0x8] sm:$0xff] %v575_v49  ;;  %v581_v54 = vadd.f32 %v575_v49, %v574_v39  ;;  %v590_v56 = vmul.f32 %v575_v49, %v575_v49 }
 0x114   :  { %v616_v50 = vadd.f32 %v615_v46, %v614_v40  ;;  %v636_v51 = vrot.slane %v635_v47, 4 }
 0x115   :  { %v582_v58 = vrot.slane %v581_v54, 4  ;;  %v591_v59 = vadd.f32 %v590_v56, %v589_v52 }
 0x116   :  { %v617_v57 = vrot.slane %v616_v50, 2  ;;  %v637_v55 = vadd.f32 %v636_v51, %v635_v47 }
 0x117   :  { %v583_v62 = vadd.f32 %v582_v58, %v581_v54  ;;  %v592_v63 = vrot.slane %v591_v59, 4 }
 0x118   :  { %v618_v60 = vadd.f32 %v617_v57, %v616_v50  ;;  %v638_v61 = vrot.slane %v637_v55, 2 }
 0x119   :  { %v584_v2 = vrot.slane %v583_v62, 2  ;;  %v593_v3 = vadd.f32 %v592_v63, %v591_v59 }
 0x11a   :  { %v639_v1 = vadd.f32 %v638_v61, %v637_v55  ;;  %v619_v0 = vrot.slane %v618_v60, 1 }
 0x11b   :  { %v585_v4 = vadd.f32 %v584_v2, %v583_v62  ;;  %v594_v5 = vrot.slane %v593_v3, 2 }
 0x11c   :  { %v640_v6 = vrot.slane %v639_v1, 1  ;;  %v620_v9 = vadd.f32 %v619_v0, %v618_v60 }
 0x11d   :  { %v586_v7 = vrot.slane %v585_v4, 1  ;;  %v595_v8 = vadd.f32 %v594_v5, %v593_v3 }
 0x11e   :  { %v641_v12 = vadd.f32 %v640_v6, %v639_v1 }
 0x11f   :  { %v587_v10 = vadd.f32 %v586_v7, %v585_v4  ;;  %v596_v11 = vrot.slane %v595_v8, 1 }
 0x121   :  { %v597_v13 = vadd.f32 %v596_v11, %v595_v8  ;;  %v621_v14 = vadd.f32 %v620_v9, %v587_v10 }
 0x123   :  { %v642_v15 = vadd.f32 %v641_v12, %v597_v13  ;;  %643 = vst [vmem:[%s1172_s5] sm:$0x1] %v621_v14 }
 0x125   :  { %644 = vst [vmem:[%s1173_s6] sm:$0x1] %v642_v15 }

// kernel: sphere_decoder.7
= control target key start
LH: loop header
LB: loop body
LE: loop exit
PB: predicated region body
PF: predicated region fallthrough
CT: control target
= control target key end

     0   :  { %s104_s0 = inlined_call_operand.vmem [shape: f32[2,16,128], index: 0, kind: input, shape index: {}, may-alias: {0,3}]   ;;  %s105_s1 = inlined_call_operand.vmem [shape: f32[1,128], index: 1, kind: input, shape index: {}]   ;;  %s106_s2 = inlined_call_operand.vmem [shape: f32[1,128], index: 2, kind: input, shape index: {}]   ;;  %s107_s3 = inlined_call_operand.vmem [shape: f32[2,16,128], index: 3, kind: output, shape index: {}, may-alias: {0,3}]  }
   0x1   :  { %v14_v0 = vld [vmem:[%s104_s0] sm:$0xff]  ;;  %v15_v4 = vld [vmem:[%s104_s0 + $0x8] sm:$0xff]  ;;  %v16_v5 = vld [vmem:[%s104_s0 + $0x10] sm:$0xff] }
   0x2   :  { %v52_v1 = vld [vmem:[%s105_s1] ss:$0 sm:$0xff]  ;;  %v17_v6 = vld [vmem:[%s104_s0 + $0x18] sm:$0xff] }
   0x3   :  { %v53_v2 = vld [vmem:[%s106_s2] ss:$0 sm:$0xff]  ;;  %v25_v3 = vmul.f32 %v52_v1, %v14_v0  ;;  %v26_v7 = vmul.f32 %v52_v1, %v15_v4  ;;  %v27_v8 = vmul.f32 %v52_v1, %v16_v5  ;;  %v28_v9 = vmul.f32 %v52_v1, %v17_v6 }
   0x5   :  { %v36_v10 = vadd.f32 %v53_v2, %v25_v3  ;;  %v37_v11 = vadd.f32 %v53_v2, %v26_v7  ;;  %v38_v12 = vadd.f32 %v53_v2, %v27_v8  ;;  %v39_v13 = vadd.f32 %v53_v2, %v28_v9 }
   0x7   :  { %v40_v14 = vmax.f32 %v36_v10, 0.0  ;;  %v41_v15 = vmax.f32 %v37_v11, 0.0  ;;  %v42_v16 = vmax.f32 %v38_v12, 0.0  ;;  %v43_v17 = vmax.f32 %v39_v13, 0.0 }
   0x9   :  { %44 = vst [vmem:[%s107_s3] sm:$0xff] %v40_v14  ;;  %45 = vst [vmem:[%s107_s3 + $0x8] sm:$0xff] %v41_v15 }
   0xa   :  { %46 = vst [vmem:[%s107_s3 + $0x10] sm:$0xff] %v42_v16  ;;  %47 = vst [vmem:[%s107_s3 + $0x18] sm:$0xff] %v43_v17 }

</bundles_post_ra>
